<compile_context>
chip_gen: v5e
topology: v5e:2x2
jax: 0.10.0
libtpu: 0.0.40
codegen_flags: <defaults>
</compile_context>

<pallas_src>
import jax
import jax.numpy as jnp
from jax import lax
from jax.experimental import pallas as pl
from jax.experimental.pallas import tpu as pltpu


def _round_up(x, m):
    return (x + m - 1) // m * m


# --------------------------------------------------------------------------- #
# Pallas kernel: per-mode-position complex channel contraction as real matmuls #
# --------------------------------------------------------------------------- #
def _spectral_mul_kernel(xr_ref, xi_ref, wr_ref, wi_ref, or_ref, oi_ref):
    """One tile of mode positions.

    Block shapes (lane-dense, padded dims):
      xr/xi : (TP, Bp, Cin_p)    bf16  real / imag spectral activations
      wr/wi : (TP, Cin_p, Cout_p) bf16  real / imag weights (streamed once each)
      or/oi : (TP, Bp, Cout_p)   f32   real / imag result

    out_r[p] = xr[p]@wr[p] - xi[p]@wi[p]
    out_i[p] = xr[p]@wi[p] + xi[p]@wr[p]
    """
    dn = (((2,), (1,)), ((0,), (0,)))  # contract channels, batch over positions
    xr = xr_ref[...]
    xi = xi_ref[...]
    wr = wr_ref[...]
    wi = wi_ref[...]
    rr = lax.dot_general(xr, wr, dn, preferred_element_type=jnp.float32)
    ii = lax.dot_general(xi, wi, dn, preferred_element_type=jnp.float32)
    ri = lax.dot_general(xr, wi, dn, preferred_element_type=jnp.float32)
    ir = lax.dot_general(xi, wr, dn, preferred_element_type=jnp.float32)
    or_ref[...] = rr - ii
    oi_ref[...] = ri + ir


def _spectral_mul_pallas(xr, xi, wr, wi):
    """xr/xi: (Pp,Bp,Cin_p) bf16; wr/wi: (Pp,Cin_p,Cout_p) bf16 -> 2x (Pp,Bp,Cout_p) f32."""
    p_pad, b_pad, cin_pad = xr.shape
    cout_pad = wr.shape[-1]

    # ---- VMEM-budget-driven position tile (per-generation, best effort) ----
    try:  # trace-time hardware query; fall back conservatively if unavailable
        vmem_phys = int(pltpu.get_tpu_info().vmem_capacity_bytes)
    except Exception:
        vmem_phys = 64 << 20  # v7x per-TC size: safe lower bound everywhere

    budget = int(0.55 * vmem_phys)  # double-buffered working-set budget
    # Bytes per mode-position: double-buffered bf16 inputs + f32 outputs.
    per_pos = (2 * 2 * b_pad * cin_pad * 2        # xr, xi
               + 2 * 2 * cin_pad * cout_pad * 2   # wr, wi
               + 2 * 2 * b_pad * cout_pad * 4)    # out_r, out_i

    # tp must divide p_pad so the activation/weight arrays need no extra
    # position padding (only the <=7-row round-up to a multiple of 8).
    divisors = [d for d in range(p_pad, 0, -1) if p_pad % d == 0]
    # Likely v7x (64 MiB VMEM, 2 TCs share the grid): prefer an even block
    # count >= 2 so both TensorCores get equal shards of the position axis.
    prefer_even_blocks = vmem_phys <= (80 << 20)
    tp = None
    if prefer_even_blocks:
        for d in divisors:
            n = p_pad // d
            if d * per_pos <= budget and n >= 2 and n % 2 == 0:
                tp = d
                break
    if tp is None:
        for d in divisors:
            if d * per_pos <= budget:
                tp = d
                break
    if tp is None:
        tp = 1
    n_blocks = p_pad // tp

    vmem_limit = int(min(max(tp * per_pos * 5 // 4, 32 << 20),
                         vmem_phys * 9 // 10))

    x_spec = pl.BlockSpec((tp, b_pad, cin_pad), lambda p: (p, 0, 0))
    w_spec = pl.BlockSpec((tp, cin_pad, cout_pad), lambda p: (p, 0, 0))
    o_spec = pl.BlockSpec((tp, b_pad, cout_pad), lambda p: (p, 0, 0))

    flops = 4 * 2 * p_pad * b_pad * cin_pad * cout_pad
    bytes_accessed = (2 * p_pad * b_pad * cin_pad * 2      # xr + xi (bf16)
                      + 2 * p_pad * cin_pad * cout_pad * 2  # wr + wi (bf16)
                      + 2 * p_pad * b_pad * cout_pad * 4)   # out_r + out_i (f32)

    out_shape = (jax.ShapeDtypeStruct((p_pad, b_pad, cout_pad), jnp.float32),
                 jax.ShapeDtypeStruct((p_pad, b_pad, cout_pad), jnp.float32))

    return pl.pallas_call(
        _spectral_mul_kernel,
        out_shape=out_shape,
        grid_spec=pltpu.PrefetchScalarGridSpec(
            num_scalar_prefetch=0,
            grid=(n_blocks,),
            in_specs=[x_spec, x_spec, w_spec, w_spec],
            out_specs=[o_spec, o_spec],
        ),
        compiler_params=pltpu.CompilerParams(
            dimension_semantics=("parallel",),
            vmem_limit_bytes=vmem_limit),
        cost_estimate=pl.CostEstimate(
            flops=flops, transcendentals=0, bytes_accessed=bytes_accessed),
    )(xr, xi, wr, wi)


# --------------------------------------------------------------------------- #
# Wrapper: weight prep (one-time) + forward pass                               #
# --------------------------------------------------------------------------- #
def prepare_spectral_weights(weights1, weights2):
    """One-time preprocessing: complex (Cin,Cout,m1,m2) x2 -> padded bf16 wr/wi.

    Returns wr, wi of shape (P_pad, Cin_pad, Cout_pad) with
    P_pad = round_up(2*m1*m2, 8), Cin_pad/Cout_pad multiples of 128 (lane-dense).
    Hoist this out of the per-step jit so weights are not re-laid-out per call.
    """
    cin, cout, m1, m2 = weights1.shape
    p_total = 2 * m1 * m2
    p_pad = _round_up(p_total, 8)
    cin_pad = _round_up(cin, 128)
    cout_pad = _round_up(cout, 128)

    w = jnp.stack([weights1, weights2], axis=0)                 # (2,Cin,Cout,m1,m2)
    w = jnp.transpose(w, (0, 3, 4, 1, 2)).reshape(p_total, cin, cout)
    pad = ((0, p_pad - p_total), (0, cin_pad - cin), (0, cout_pad - cout))
    wr = jnp.pad(jnp.real(w), pad).astype(jnp.bfloat16)
    wi = jnp.pad(jnp.imag(w), pad).astype(jnp.bfloat16)
    return wr, wi


def spectral_conv2d_fast_prepared(x, wr, wi, modes1, modes2, out_channels):
    """Forward pass using pre-laid-out bf16 weights from prepare_spectral_weights.

    x: (B, Cin, H, W) float32 (NCHW) -> (B, out_channels, H, W) float32
    """
    B, Cin, H, W = x.shape
    Wf = W // 2 + 1
    p_total = 2 * modes1 * modes2
    p_pad, cin_pad, cout_pad = wr.shape
    b_pad = _round_up(B, 8)

    x_ft = jnp.fft.rfft2(x)                                     # (B,Cin,H,Wf) c64

    # Gather both kept mode corners: p = corner*m1*m2 + row*m2 + col.
    corners = jnp.concatenate(
        [x_ft[:, :, :modes1, :modes2], x_ft[:, :, H - modes1:, :modes2]], axis=2)
    xc = jnp.transpose(corners.reshape(B, Cin, p_total), (2, 0, 1))  # (P,B,Cin)
    pad = ((0, p_pad - p_total), (0, b_pad - B), (0, cin_pad - Cin))
    xr = jnp.pad(jnp.real(xc), pad).astype(jnp.bfloat16)
    xi = jnp.pad(jnp.imag(xc), pad).astype(jnp.bfloat16)

    out_r, out_i = _spectral_mul_pallas(xr, xi, wr, wi)         # (Pp,Bp,Coutp) f32

    out_c = lax.complex(out_r[:p_total, :B, :out_channels],
                        out_i[:p_total, :B, :out_channels])     # (P,B,Cout)
    out_c = jnp.transpose(out_c, (1, 2, 0)).reshape(
        B, out_channels, 2, modes1, modes2)

    out_ft = jnp.zeros((B, out_channels, H, Wf), dtype=jnp.complex64)
    out_ft = out_ft.at[:, :, :modes1, :modes2].set(out_c[:, :, 0])
    out_ft = out_ft.at[:, :, H - modes1:, :modes2].set(out_c[:, :, 1])

    return jnp.fft.irfft2(out_ft, s=(H, W)).astype(jnp.float32)


def _einsum_forward(x, weights1, weights2, modes1, modes2):
    """Pure-JAX path mirroring the PyTorch module (fallback + correctness ref)."""
    B, Cin, H, W = x.shape
    Cout = weights1.shape[1]
    Wf = W // 2 + 1
    x_ft = jnp.fft.rfft2(x)
    out_ft = jnp.zeros((B, Cout, H, Wf), dtype=jnp.complex64)
    out_ft = out_ft.at[:, :, :modes1, :modes2].set(
        jnp.einsum('bixy,ioxy->boxy', x_ft[:, :, :modes1, :modes2], weights1))
    out_ft = out_ft.at[:, :, H - modes1:, :modes2].set(
        jnp.einsum('bixy,ioxy->boxy', x_ft[:, :, H - modes1:, :modes2], weights2))
    return jnp.fft.irfft2(out_ft, s=(H, W)).astype(jnp.float32)


def spectral_conv2d_fast(x, weights1, weights2, modes1, modes2, use_pallas=None):
    """Convenience entry point matching the PyTorch module signature.

    use_pallas: True/False forces the path; None auto-gates by problem size
    (tiny contractions are better served by one fused XLA einsum).
    """
    B, Cin, H, W = x.shape
    Cout = weights1.shape[1]
    if use_pallas is None:
        use_pallas = (2 * modes1 * modes2) * B * Cin * Cout >= (1 << 20)
    if not use_pallas:
        return _einsum_forward(x, weights1, weights2, modes1, modes2)
    wr, wi = prepare_spectral_weights(weights1, weights2)
    return spectral_conv2d_fast_prepared(x, wr, wi, modes1, modes2, Cout)


if __name__ == "__main__":
    # Module config (small, consistent with the PyTorch __init__)
    in_channels, out_channels = 4, 4
    modes1, modes2 = 4, 4
    B, H, W = 2, 16, 16

    key = jax.random.PRNGKey(0)
    kx, kw1r, kw1i, kw2r, kw2i = jax.random.split(key, 5)

    x = jax.random.normal(kx, (B, in_channels, H, W), dtype=jnp.float32)

    scale = 1.0 / (in_channels * out_channels)
    wshape = (in_channels, out_channels, modes1, modes2)
    # torch.rand(..., dtype=cfloat): real & imag ~ U[0,1) independently.
    weights1 = scale * lax.complex(
        jax.random.uniform(kw1r, wshape, dtype=jnp.float32),
        jax.random.uniform(kw1i, wshape, dtype=jnp.float32)).astype(jnp.complex64)
    weights2 = scale * lax.complex(
        jax.random.uniform(kw2r, wshape, dtype=jnp.float32),
        jax.random.uniform(kw2i, wshape, dtype=jnp.float32)).astype(jnp.complex64)

    # One-time weight preprocessing, hoisted out of the per-step jit.
    wr_p, wi_p = prepare_spectral_weights(weights1, weights2)

    # Pallas path (forced, to exercise the kernel even at this tiny size).
    fwd = jax.jit(lambda xx, wr, wi: spectral_conv2d_fast_prepared(
        xx, wr, wi, modes1, modes2, out_channels))
    out = jax.block_until_ready(fwd(x, wr_p, wi_p))

    ref = jax.block_until_ready(
        _einsum_forward(x, weights1, weights2, modes1, modes2))
    assert out.shape == (B, out_channels, H, W)
    # bf16 MXU inputs (f32 accumulation): compare with a loosened tolerance.
    assert bool(jnp.allclose(out, ref, atol=2e-2, rtol=2e-2))

    # Auto-gated convenience entry point (falls back to einsum at this size).
    out_auto = jax.block_until_ready(
        jax.jit(lambda xx: spectral_conv2d_fast(
            xx, weights1, weights2, modes1, modes2))(x))
    assert bool(jnp.allclose(out_auto, ref, atol=1e-5, rtol=1e-5))

    print("KERNEL_OK")
</pallas_src>

<mosaic_0001>
module attributes {stable_mosaic.version = 11 : i64} {
  func.func @_spectral_mul_kernel(%arg0: i32, %arg1: memref<16x8x128xbf16, #tpu.memory_space<vmem>>, %arg2: memref<16x8x128xbf16, #tpu.memory_space<vmem>>, %arg3: memref<16x128x128xbf16, #tpu.memory_space<vmem>>, %arg4: memref<16x128x128xbf16, #tpu.memory_space<vmem>>, %arg5: memref<16x8x128xf32, #tpu.memory_space<vmem>>, %arg6: memref<16x8x128xf32, #tpu.memory_space<vmem>>) attributes {dimension_semantics = [#tpu.dimension_semantics<parallel>], iteration_bounds = array<i64: 2>, scalar_prefetch = 0 : i64, scratch_operands = 0 : i64, tpu.core_type = #tpu.core_type<tc>, window_params = [{transform_indices = @transform_0, window_bounds = array<i64: 16, 8, 128>}, {transform_indices = @transform_1, window_bounds = array<i64: 16, 8, 128>}, {transform_indices = @transform_2, window_bounds = array<i64: 16, 128, 128>}, {transform_indices = @transform_3, window_bounds = array<i64: 16, 128, 128>}, {transform_indices = @transform_4, window_bounds = array<i64: 16, 8, 128>}, {transform_indices = @transform_5, window_bounds = array<i64: 16, 8, 128>}]} {
    %c0 = arith.constant 0 : index
    %c0_0 = arith.constant 0 : index
    %c0_1 = arith.constant 0 : index
    %0 = vector.load %arg1[%c0, %c0_0, %c0_1] : memref<16x8x128xbf16, #tpu.memory_space<vmem>>, vector<16x8x128xbf16>
    %c0_2 = arith.constant 0 : index
    %c0_3 = arith.constant 0 : index
    %c0_4 = arith.constant 0 : index
    %1 = vector.load %arg2[%c0_2, %c0_3, %c0_4] : memref<16x8x128xbf16, #tpu.memory_space<vmem>>, vector<16x8x128xbf16>
    %c0_5 = arith.constant 0 : index
    %c0_6 = arith.constant 0 : index
    %c0_7 = arith.constant 0 : index
    %2 = vector.load %arg3[%c0_5, %c0_6, %c0_7] : memref<16x128x128xbf16, #tpu.memory_space<vmem>>, vector<16x128x128xbf16>
    %c0_8 = arith.constant 0 : index
    %c0_9 = arith.constant 0 : index
    %c0_10 = arith.constant 0 : index
    %3 = vector.load %arg4[%c0_8, %c0_9, %c0_10] : memref<16x128x128xbf16, #tpu.memory_space<vmem>>, vector<16x128x128xbf16>
    %cst = arith.constant dense<0.000000e+00> : vector<16x8x128xf32>
    %4 = tpu.matmul %0, %2, %cst {dimension_numbers = #tpu.dot_dimension_numbers<[2], [1], [1], [2], [0, 0, 0, 1, 1, 2], [0], [0]>} : vector<16x8x128xbf16>, vector<16x128x128xbf16>, vector<16x8x128xf32> -> vector<16x8x128xf32>
    %cst_11 = arith.constant dense<0.000000e+00> : vector<16x8x128xf32>
    %5 = tpu.matmul %1, %3, %cst_11 {dimension_numbers = #tpu.dot_dimension_numbers<[2], [1], [1], [2], [0, 0, 0, 1, 1, 2], [0], [0]>} : vector<16x8x128xbf16>, vector<16x128x128xbf16>, vector<16x8x128xf32> -> vector<16x8x128xf32>
    %cst_12 = arith.constant dense<0.000000e+00> : vector<16x8x128xf32>
    %6 = tpu.matmul %0, %3, %cst_12 {dimension_numbers = #tpu.dot_dimension_numbers<[2], [1], [1], [2], [0, 0, 0, 1, 1, 2], [0], [0]>} : vector<16x8x128xbf16>, vector<16x128x128xbf16>, vector<16x8x128xf32> -> vector<16x8x128xf32>
    %cst_13 = arith.constant dense<0.000000e+00> : vector<16x8x128xf32>
    %7 = tpu.matmul %1, %2, %cst_13 {dimension_numbers = #tpu.dot_dimension_numbers<[2], [1], [1], [2], [0, 0, 0, 1, 1, 2], [0], [0]>} : vector<16x8x128xbf16>, vector<16x128x128xbf16>, vector<16x8x128xf32> -> vector<16x8x128xf32>
    %8 = arith.subf %4, %5 : vector<16x8x128xf32>
    %c0_14 = arith.constant 0 : index
    %c0_15 = arith.constant 0 : index
    %c0_16 = arith.constant 0 : index
    %9 = vector.load %arg5[%c0_14, %c0_15, %c0_16] : memref<16x8x128xf32, #tpu.memory_space<vmem>>, vector<16x8x128xf32>
    tpu.vector_store %arg5[%c0_14, %c0_15, %c0_16], %8 {strides = array<i32>} : memref<16x8x128xf32, #tpu.memory_space<vmem>>, vector<16x8x128xf32>,
    %10 = arith.addf %6, %7 : vector<16x8x128xf32>
    %c0_17 = arith.constant 0 : index
    %c0_18 = arith.constant 0 : index
    %c0_19 = arith.constant 0 : index
    %11 = vector.load %arg6[%c0_17, %c0_18, %c0_19] : memref<16x8x128xf32, #tpu.memory_space<vmem>>, vector<16x8x128xf32>
    tpu.vector_store %arg6[%c0_17, %c0_18, %c0_19], %10 {strides = array<i32>} : memref<16x8x128xf32, #tpu.memory_space<vmem>>, vector<16x8x128xf32>,
    return
  }
  func.func @transform_0(%arg0: i32) -> (i32, i32, i32) {
    %c0_i32 = arith.constant 0 : i32
    %c0_i32_0 = arith.constant 0 : i32
    %c0_i32_1 = arith.constant 0 : i32
    return %arg0, %c0_i32, %c0_i32_0 : i32, i32, i32
  }
  func.func @transform_1(%arg0: i32) -> (i32, i32, i32) {
    %c0_i32 = arith.constant 0 : i32
    %c0_i32_0 = arith.constant 0 : i32
    %c0_i32_1 = arith.constant 0 : i32
    return %arg0, %c0_i32, %c0_i32_0 : i32, i32, i32
  }
  func.func @transform_2(%arg0: i32) -> (i32, i32, i32) {
    %c0_i32 = arith.constant 0 : i32
    %c0_i32_0 = arith.constant 0 : i32
    %c0_i32_1 = arith.constant 0 : i32
    return %arg0, %c0_i32, %c0_i32_0 : i32, i32, i32
  }
  func.func @transform_3(%arg0: i32) -> (i32, i32, i32) {
    %c0_i32 = arith.constant 0 : i32
    %c0_i32_0 = arith.constant 0 : i32
    %c0_i32_1 = arith.constant 0 : i32
    return %arg0, %c0_i32, %c0_i32_0 : i32, i32, i32
  }
  func.func @transform_4(%arg0: i32) -> (i32, i32, i32) {
    %c0_i32 = arith.constant 0 : i32
    %c0_i32_0 = arith.constant 0 : i32
    %c0_i32_1 = arith.constant 0 : i32
    return %arg0, %c0_i32, %c0_i32_0 : i32, i32, i32
  }
  func.func @transform_5(%arg0: i32) -> (i32, i32, i32) {
    %c0_i32 = arith.constant 0 : i32
    %c0_i32_0 = arith.constant 0 : i32
    %c0_i32_1 = arith.constant 0 : i32
    return %arg0, %c0_i32, %c0_i32_0 : i32, i32, i32
  }
}

</mosaic_0001>

<bundles_post_ra>
// kernel: reverse.1
= control target key start
LH: loop header
LB: loop body
LE: loop exit
PB: predicated region body
PF: predicated region fallthrough
CT: control target
= control target key end

     0   :  { %v72_v3 = vlaneseq  ;;  %v65_v6 = vld [vmem:[#allocation0 + $0x7] ss:$-1 sm:$0xff]  ;;  %v79_v8 = vld [vmem:[#allocation0 + $0x17] ss:$-1 sm:$0xff]  ;;  %s331_s0 = inlined_call_operand.vmem [shape: f32[2,4,16,7], index: 0, kind: input, shape index: {}]   ;;  %s332_s1 = inlined_call_operand.vmem [shape: f32[2,4,16,7], index: 1, kind: output, shape index: {}]  }
   0x1   :  { %v45_v0 = vld [vmem:[%s331_s0] sm:$0xff]  ;;  %v47_v1 = vld [vmem:[%s331_s0 + $0x8] sm:$0xff]  ;;  %v49_v2 = vld [vmem:[%s331_s0 + $0x10] sm:$0xff]  ;;  %v66_v12 = vrot.slane %v65_v6, 1  ;;  %v80_v13 = vrot.slane %v79_v8, 1 }
   0x2   :  { %46 = vst [vmem:[#allocation0 + $0x8] sm:$0xff] %v45_v0  ;;  %v51_v4 = vld [vmem:[%s331_s0 + $0x18] sm:$0xff]  ;;  %v53_v5 = vld [vmem:[%s331_s0 + $0x20] sm:$0xff]  ;;  %v55_v7 = vld [vmem:[%s331_s0 + $0x28] sm:$0xff]  ;;  %v73_v10 = vshrl.u32 %v72_v3, 7 }
   0x3   :  { %48 = vst [vmem:[#allocation0 + $0x18] sm:$0xff] %v47_v1  ;;  %v57_v9 = vld [vmem:[%s331_s0 + $0x30] sm:$0xff]  ;;  %v59_v11 = vld [vmem:[%s331_s0 + $0x38] sm:$0xff]  ;;  %v93_v14 = vld [vmem:[#allocation0 + $0x27] ss:$-1 sm:$0xff] }
   0x4   :  { %50 = vst [vmem:[#allocation0 + $0x28] sm:$0xff] %v49_v2  ;;  %vm74_vm0 = vcmp.lt.s32.totalorder %v73_v10, 7  ;;  %v107_v16 = vld [vmem:[#allocation0 + $0x37] ss:$-1 sm:$0xff]  ;;  %v94_v19 = vrot.slane %v93_v14, 1 }
   0x5   :  { %52 = vst [vmem:[#allocation0 + $0x38] sm:$0xff] %v51_v4  ;;  %v121_v22 = vld [vmem:[#allocation0 + $0x47] ss:$-1 sm:$0xff]  ;;  %v108_v24 = vrot.slane %v107_v16, 1  ;;  %v135_v28 = vld [vmem:[#allocation0 + $0x57] ss:$-1 sm:$0xff] }
   0x6   :  { %54 = vst [vmem:[#allocation0 + $0x48] sm:$0xff] %v53_v5  ;;  %v122_v29 = vrot.slane %v121_v22, 1  ;;  %v149_v32 = vld [vmem:[#allocation0 + $0x67] ss:$-1 sm:$0xff]  ;;  %v136_v33 = vrot.slane %v135_v28, 1 }
   0x7   :  { %56 = vst [vmem:[#allocation0 + $0x58] sm:$0xff] %v55_v7  ;;  %v163_v36 = vld [vmem:[#allocation0 + $0x77] ss:$-1 sm:$0xff]  ;;  %v150_v37 = vrot.slane %v149_v32, 1 }
   0x8   :  { %58 = vst [vmem:[#allocation0 + $0x68] sm:$0xff] %v57_v9  ;;  %v164_v40 = vrot.slane %v163_v36, 1 }
   0x9   :  { %60 = vst [vmem:[#allocation0 + $0x78] sm:$0xff] %v59_v11  ;;  %v70_v15 = vld [vmem:[#allocation0 + $0xf] ss:$-1 sm:$0xff] }
   0xa   :  { %67 = vst [vmem:[#allocation1] sm:$0xff] %v66_v12  ;;  %v71_v17 = vrot.slane %v70_v15, 1  ;;  %v84_v18 = vld [vmem:[#allocation0 + $0x1f] ss:$-1 sm:$0xff] }
   0xb   :  { %81 = vst [vmem:[#allocation1 + $0x8] sm:$0xff] %v80_v13  ;;  %v85_v20 = vrot.slane %v84_v18, 1  ;;  %v98_v21 = vld [vmem:[#allocation0 + $0x2f] ss:$-1 sm:$0xff] }
   0xc   :  { %75 = vst.msk [vmem:[#allocation1] sm:$0xff] %vm74_vm0, %v71_v17  ;;  %v99_v23 = vrot.slane %v98_v21, 1  ;;  %v112_v25 = vld [vmem:[#allocation0 + $0x3f] ss:$-1 sm:$0xff] }
   0xd   :  { %89 = vst.msk [vmem:[#allocation1 + $0x8] sm:$0xff] %vm74_vm0, %v85_v20  ;;  %v113_v26 = vrot.slane %v112_v25, 1  ;;  %v126_v27 = vld [vmem:[#allocation0 + $0x4f] ss:$-1 sm:$0xff] }
   0xe   :  { %95 = vst [vmem:[#allocation1 + $0x10] sm:$0xff] %v94_v19  ;;  %v140_v30 = vld [vmem:[#allocation0 + $0x5f] ss:$-1 sm:$0xff]  ;;  %v127_v31 = vrot.slane %v126_v27, 1 }
   0xf   :  { %103 = vst.msk [vmem:[#allocation1 + $0x10] sm:$0xff] %vm74_vm0, %v99_v23  ;;  %v154_v34 = vld [vmem:[#allocation0 + $0x6f] ss:$-1 sm:$0xff]  ;;  %v141_v35 = vrot.slane %v140_v30, 1 }
  0x10   :  { %109 = vst [vmem:[#allocation1 + $0x18] sm:$0xff] %v108_v24  ;;  %v168_v38 = vld [vmem:[#allocation0 + $0x7f] ss:$-1 sm:$0xff]  ;;  %v155_v39 = vrot.slane %v154_v34, 1 }
  0x11   :  { %117 = vst.msk [vmem:[#allocation1 + $0x18] sm:$0xff] %vm74_vm0, %v113_v26  ;;  %v169_v41 = vrot.slane %v168_v38, 1 }
  0x12   :  { %123 = vst [vmem:[#allocation1 + $0x20] sm:$0xff] %v122_v29 }
  0x13   :  { %131 = vst.msk [vmem:[#allocation1 + $0x20] sm:$0xff] %vm74_vm0, %v127_v31  ;;  %v216_v42 = vld [vmem:[#allocation1] sm:$0xff] }
  0x14   :  { %137 = vst [vmem:[#allocation1 + $0x28] sm:$0xff] %v136_v33  ;;  %v218_v43 = vld [vmem:[#allocation1 + $0x8] sm:$0xff] }
  0x15   :  { %145 = vst.msk [vmem:[#allocation1 + $0x28] sm:$0xff] %vm74_vm0, %v141_v35 }
  0x16   :  { %151 = vst [vmem:[#allocation1 + $0x30] sm:$0xff] %v150_v37  ;;  %v220_v44 = vld [vmem:[#allocation1 + $0x10] sm:$0xff] }
  0x17   :  { %159 = vst.msk [vmem:[#allocation1 + $0x30] sm:$0xff] %vm74_vm0, %v155_v39 }
  0x18   :  { %165 = vst [vmem:[#allocation1 + $0x38] sm:$0xff] %v164_v40  ;;  %v222_v45 = vld [vmem:[#allocation1 + $0x18] sm:$0xff] }
  0x19   :  { %173 = vst.msk [vmem:[#allocation1 + $0x38] sm:$0xff] %vm74_vm0, %v169_v41 }
  0x1a   :  { %217 = vst [vmem:[%s332_s1] sm:$0xff] %v216_v42  ;;  %v224_v46 = vld [vmem:[#allocation1 + $0x20] sm:$0xff] }
  0x1b   :  { %219 = vst [vmem:[%s332_s1 + $0x8] sm:$0xff] %v218_v43 }
  0x1c   :  { %221 = vst [vmem:[%s332_s1 + $0x10] sm:$0xff] %v220_v44  ;;  %v226_v47 = vld [vmem:[#allocation1 + $0x28] sm:$0xff] }
  0x1d   :  { %223 = vst [vmem:[%s332_s1 + $0x18] sm:$0xff] %v222_v45 }
  0x1e   :  { %225 = vst [vmem:[%s332_s1 + $0x20] sm:$0xff] %v224_v46  ;;  %v228_v48 = vld [vmem:[#allocation1 + $0x30] sm:$0xff] }
  0x1f   :  { %227 = vst [vmem:[%s332_s1 + $0x28] sm:$0xff] %v226_v47 }
  0x20   :  { %229 = vst [vmem:[%s332_s1 + $0x30] sm:$0xff] %v228_v48  ;;  %v230_v49 = vld [vmem:[#allocation1 + $0x38] sm:$0xff] }
  0x21   :  { %231 = vst [vmem:[%s332_s1 + $0x38] sm:$0xff] %v230_v49 }

// kernel: _lambda_.1
= control target key start
LH: loop header
LB: loop body
LE: loop exit
PB: predicated region body
PF: predicated region fallthrough
CT: control target
= control target key end

     0   :  { %11 = vsyncpa [#allocation3], 0  ;;  %s6257_s0 = inlined_call_operand.vmem [shape: bf16[32,8,128], index: 0, kind: input, shape index: {}]   ;;  %s6258_s1 = inlined_call_operand.vmem [shape: bf16[32,8,128], index: 1, kind: input, shape index: {}]   ;;  %s6259_s2 = inlined_call_operand.vmem [shape: bf16[32,128,128], index: 2, kind: input, shape index: {}]   ;;  %s6260_s3 = inlined_call_operand.hbm [shape: bf16[32,128,128], index: 3, kind: input, shape index: {}]   ;;  %s6261_s4 = inlined_call_operand.vmem [shape: f32[32,8,128], index: 4, kind: output, shape index: {0}]   ;;  %s6262_s5 = inlined_call_operand.vmem [shape: f32[32,8,128], index: 5, kind: output, shape index: {1}]  }
   0x1   :  { %13 = vsyncpa [#allocation3 + $0x1], 0  ;;  %s5029_s18 = smov 0   ;;  %s5031_s19 = smov 0  }
   0x2   :  { %s5033_s20 = smov 0   ;;  %s5035_s21 = smov 0  }
   0x3 LB: > { %s3430_s22 = sadd.s32 4294967295, %s4995_s21   ;;  %s5049_s23 = sadd.s32 1, %s4995_s21   ;;  %s4995_s21 = sphi %s5035_s21, %s6554_s21   ;;  %s4991_s20 = sphi %s5033_s20, %s6553_s20   ;;  %s4987_s19 = sphi %s5031_s19, %s6552_s19   ;;  %s4983_s18 = sphi %s5029_s18, %s6551_s18  }
   0x4   : > { %s101_s24 = ssub.s32 %s4995_s21, %s5049_s23  ;;  %s104_s25 = sadd.s32 1, %s4991_s20 }
   0x5   : > { %p102_p0 = scmp.eq.s32.totalorder %s101_s24, 0  ;;  %p111_p1 = scmp.ne.s32.totalorder %s4991_s20, %s4987_s19 }
   0x6   : > { %p112_p2 = scmp.eq.s32.totalorder %s4995_s21, 0  ;;  %p117_p3 = scmp.ne.s32.totalorder %s4987_s19, %s4983_s18 }
   0x7   : > { %s5059_s26 = scalar_select %p102_p0, %s4991_s20, %s104_s25  }
   0x8   : > { %p5061_p4 = por %p112_p2, %p111_p1  ;;  %p118_p5 = scmp.eq.s32.totalorder %s3430_s22, 0 }
   0x9   : > { %p4742_p6 = scmp.lt.s32.totalorder %s4995_s21, 2  ;;  %s221_s29 = sand.u32 1, %s4991_s20  }
   0xa   : > { %p5068_p7 = por %p118_p5, %p117_p3  ;;  %s3434_s30 = sshll.u32 %s221_s29, 10 }
   0xb   : > { %s4478_s6 = sshll.u32 %s4995_s21, 10  ;;  %s225_s10 = scalar_lea.vmem [#allocation2], %s3434_s30 }
   0xc   : > { %s231_s9 = scalar_lea.hbm %s6260_s3, %s4478_s6  ;;  %s234_s11 = sshll.u32 %s225_s10, 4  ;;  %s235_s11 = int_to_ptr.vmem [resolvable:$true] %s234_s11 }
   0xd   : > { %s232_s12 = sshll.u32 %s231_s9, 4  ;;  %p5079_p8 = pnand %p4742_p6, %p5061_p4  ;;  %s233_s12 = int_to_ptr.hbm [resolvable:$true] %s232_s12 }
   0xe   : > { %p3438_p9 = scmp.ge.s32.totalorder %s4995_s21, 1  ;;  %s222_s14 = scalar_lea.sflag [#allocation3], %s221_s29 }
   0xf   : > { %s4931_s15 = sshra.s32 %s233_s12, 4  ;;  %p4935_p11 = pneg %p5079_p8  ;;  %s4932_s15 = int_to_ptr.hbm [resolvable:$true] %s4931_s15 }
  0x10   : > { %s4933_s16 = scalar_lea.hbm %s4932_s15, 1024  ;;  %s4938_s24 = scalar_lea.hbm %s6260_s3, 2048 }
  0x11   : > { %p4934_p10 = scmp.ne.s32.totalorder %s4932_s15, %s4933_s16  ;;  %p4939_p0 = scmp.lt.s32.totalorder %s4932_s15, %s6260_s3 }
  0x12   : > { %p4940_p1 = scmp.lt.s32.totalorder %s4938_s24, %s4933_s16 }
  0x13   : > { %p4936_p12 = pnand %p4935_p11, %p4934_p10 }
  0x14   : > { %p4941_p2 = por %p4940_p1, %p4939_p0 }
  0x15   : > { %p4937_p13 = pneg %p4936_p12 }
  0x17   : > { %p4942_p3 = pnand %p4941_p2, %p4937_p13 }
  0x19   : > { %4945 = shalt.err (!%p4942_p3)
}
  0x1a   : > { %s4997_s29 = smov 64   ;;  %s4998_s30 = smov 4  }
  0x1b   : > { %4741 = dma.hbm_to_vmem [thread:$0]  (!%p5079_p8), %s233_s12, 16384, %s235_s11, %s222_s14, %s4997_s29, %s4997_s29, %s4998_s30  }
  0x1c   : > { %p242_p4 = scmp.lt.s32.totalorder %s4995_s21, 3 }
  0x1e   : > { %p243_p5 = pnand %p3438_p9, %p242_p4 }
  0x20   : > { %246 = sbr.rel (%p243_p5) target bundleno = 702 (0x2be), region = 36 }
  0x25   : > { %s248_s6 = sand.u32 1, %s4987_s19  }
  0x26   : > { %s3439_s7 = sshll.u32 %s248_s6, 10  ;;  %s249_s8 = scalar_lea.sflag [#allocation3], %s248_s6 }
  0x27   : > { %s5098_s9 = scalar_lea.vmem [#allocation2], %s3439_s7 }
  0x28   : > { %4978 = dma.done.wait (%p5068_p7), %s249_s8, 16384  }
  0x29   : > { %4980 = vsyncadd (%p5068_p7), %s249_s8, 4294950912  ;;  %s3440_s10 = sshll.u32 %s3430_s22, 4 }
  0x2a   : > { %p302_p6 = scmp.lt.s32.totalorder %s3440_s10, 31 }
  0x2c   : > { %s6556_s10 = smov (!%p302_p6, %s3440_s10), 31 }
  0x2d   : > { %s4479_s11 = sshll.u32 %s6556_s10, 6  ;;  %s3441_s21 = sshll.u32 %s6556_s10, 2 }
  0x2e   : > { %s5112_s14 = scalar_lea.vmem %s6259_s2, %s4479_s11  ;;  %s5154_s15 = scalar_lea.vmem %s6257_s0, %s3441_s21 }
  0x2f   : > { %v4487_v0 = vld [vmem:[%s5112_s14 + $0x38] sm:$0xff]  ;;  %v4486_v4 = vld [vmem:[%s5112_s14 + $0x30] sm:$0xff]  ;;  %v4485_v8 = vld [vmem:[%s5112_s14 + $0x28] sm:$0xff]  ;;  %s5365_s18 = scalar_lea.vmem %s6258_s1, %s3441_s21  ;;  %s3448_s24 = sshll.u32 %s6556_s10, 3 }
  0x30   : > { %v4495_v1 = vld [vmem:[%s5112_s14 + $0x78] sm:$0xff]  ;;  %925 = vmatpush.bf16.msra.mxu0 %v4487_v0  ;;  %v4494_v5 = vld [vmem:[%s5112_s14 + $0x70] sm:$0xff]  ;;  %v4493_v9 = vld [vmem:[%s5112_s14 + $0x68] sm:$0xff]  ;;  %s5901_s29 = scalar_lea.vmem %s6261_s4, %s3448_s24  ;;  %s6212_s7 = scalar_lea.vmem %s6262_s5, %s3448_s24 }
  0x31   : > { %v4503_v2 = vld [vmem:[%s5112_s14 + $0xb8] sm:$0xff]  ;;  %986 = vmatpush.bf16.msra.mxu1 %v4495_v1  ;;  %v4502_v6 = vld [vmem:[%s5112_s14 + $0xb0] sm:$0xff]  ;;  %v4501_v10 = vld [vmem:[%s5112_s14 + $0xa8] sm:$0xff] }
  0x32   : > { %v4511_v3 = vld [vmem:[%s5112_s14 + $0xf8] sm:$0xff]  ;;  %1047 = vmatpush.bf16.msra.mxu2 %v4503_v2  ;;  %v4510_v7 = vld [vmem:[%s5112_s14 + $0xf0] sm:$0xff]  ;;  %v4509_v11 = vld [vmem:[%s5112_s14 + $0xe8] sm:$0xff] }
  0x33   : > { %1108 = vmatpush.bf16.msra.mxu3 %v4511_v3  ;;  %v4484_v12 = vld [vmem:[%s5112_s14 + $0x20] sm:$0xff]  ;;  %v4483_v16 = vld [vmem:[%s5112_s14 + $0x18] sm:$0xff]  ;;  %v4482_v20 = vld [vmem:[%s5112_s14 + $0x10] sm:$0xff] }
  0x34   : > { %926 = vmatpush.bf16.msra.mxu0 %v4486_v4  ;;  %v4492_v13 = vld [vmem:[%s5112_s14 + $0x60] sm:$0xff]  ;;  %v4491_v17 = vld [vmem:[%s5112_s14 + $0x58] sm:$0xff]  ;;  %v4490_v21 = vld [vmem:[%s5112_s14 + $0x50] sm:$0xff] }
  0x35   : > { %987 = vmatpush.bf16.msra.mxu1 %v4494_v5  ;;  %v4500_v14 = vld [vmem:[%s5112_s14 + $0xa0] sm:$0xff]  ;;  %v4499_v18 = vld [vmem:[%s5112_s14 + $0x98] sm:$0xff]  ;;  %v4498_v22 = vld [vmem:[%s5112_s14 + $0x90] sm:$0xff] }
  0x36   : > { %1048 = vmatpush.bf16.msra.mxu2 %v4502_v6  ;;  %v4508_v15 = vld [vmem:[%s5112_s14 + $0xe0] sm:$0xff]  ;;  %v4507_v19 = vld [vmem:[%s5112_s14 + $0xd8] sm:$0xff]  ;;  %v4506_v23 = vld [vmem:[%s5112_s14 + $0xd0] sm:$0xff] }
  0x37   : > { %1109 = vmatpush.bf16.msra.mxu3 %v4510_v7  ;;  %v4481_v24 = vld [vmem:[%s5112_s14 + $0x8] sm:$0xff]  ;;  %v4480_v28 = vld [vmem:[%s5112_s14] sm:$0xff]  ;;  %v4519_v32 = vld [vmem:[%s5112_s14 + $0x138] sm:$0xff] }
  0x38   : > { %927 = vmatpush.bf16.msra.mxu0 %v4485_v8  ;;  %v4489_v25 = vld [vmem:[%s5112_s14 + $0x48] sm:$0xff]  ;;  %v4488_v29 = vld [vmem:[%s5112_s14 + $0x40] sm:$0xff]  ;;  %v4527_v33 = vld [vmem:[%s5112_s14 + $0x178] sm:$0xff] }
  0x39   : > { %988 = vmatpush.bf16.msra.mxu1 %v4493_v9  ;;  %v4497_v26 = vld [vmem:[%s5112_s14 + $0x88] sm:$0xff]  ;;  %v4496_v30 = vld [vmem:[%s5112_s14 + $0x80] sm:$0xff]  ;;  %v4535_v34 = vld [vmem:[%s5112_s14 + $0x1b8] sm:$0xff] }
  0x3a   : > { %1049 = vmatpush.bf16.msra.mxu2 %v4501_v10  ;;  %v4505_v27 = vld [vmem:[%s5112_s14 + $0xc8] sm:$0xff]  ;;  %v4504_v31 = vld [vmem:[%s5112_s14 + $0xc0] sm:$0xff]  ;;  %v4543_v35 = vld [vmem:[%s5112_s14 + $0x1f8] sm:$0xff] }
  0x3b   : > { %1110 = vmatpush.bf16.msra.mxu3 %v4509_v11  ;;  %v4518_v36 = vld [vmem:[%s5112_s14 + $0x130] sm:$0xff]  ;;  %v335_v37 = vld [vmem:[%s5154_s15 + $0x8] sm:$0xf]  ;;  %v336_v38 = vld [vmem:[%s5154_s15 + $0xc] sm:$0xf] }
  0x3c   : > { %928 = vmatpush.bf16.msra.mxu0 %v4484_v12  ;;  %v4526_v39 = vld [vmem:[%s5112_s14 + $0x170] sm:$0xff]  ;;  %v333_v40 = vld [vmem:[%s5154_s15] sm:$0xf]  ;;  %v334_v41 = vld [vmem:[%s5154_s15 + $0x4] sm:$0xf] }
  0x3d   : > { %989 = vmatpush.bf16.msra.mxu1 %v4492_v13  ;;  %v4534_v42 = vld [vmem:[%s5112_s14 + $0x1b0] sm:$0xff]  ;;  %v4517_v44 = vld [vmem:[%s5112_s14 + $0x128] sm:$0xff]  ;;  %v4516_v48 = vld [vmem:[%s5112_s14 + $0x120] sm:$0xff] }
  0x3e   : > { %1050 = vmatpush.bf16.msra.mxu2 %v4500_v14  ;;  %v4542_v43 = vld [vmem:[%s5112_s14 + $0x1f0] sm:$0xff]  ;;  %v4525_v45 = vld [vmem:[%s5112_s14 + $0x168] sm:$0xff]  ;;  %v4524_v49 = vld [vmem:[%s5112_s14 + $0x160] sm:$0xff] }
  0x3f   : > { %1111 = vmatpush.bf16.msra.mxu3 %v4508_v15  ;;  %v4533_v46 = vld [vmem:[%s5112_s14 + $0x1a8] sm:$0xff]  ;;  %v4532_v50 = vld [vmem:[%s5112_s14 + $0x1a0] sm:$0xff]  ;;  %v4515_v52 = vld [vmem:[%s5112_s14 + $0x118] sm:$0xff] }
  0x40   : > { %929 = vmatpush.bf16.msra.mxu0 %v4483_v16  ;;  %v4541_v47 = vld [vmem:[%s5112_s14 + $0x1e8] sm:$0xff]  ;;  %v4540_v51 = vld [vmem:[%s5112_s14 + $0x1e0] sm:$0xff]  ;;  %v4523_v53 = vld [vmem:[%s5112_s14 + $0x158] sm:$0xff] }
  0x41   : > { %990 = vmatpush.bf16.msra.mxu1 %v4491_v17  ;;  %v4531_v54 = vld [vmem:[%s5112_s14 + $0x198] sm:$0xff]  ;;  %v4514_v56 = vld [vmem:[%s5112_s14 + $0x110] sm:$0xff]  ;;  %v4513_v60 = vld [vmem:[%s5112_s14 + $0x108] sm:$0xff] }
  0x42   : > { %1051 = vmatpush.bf16.msra.mxu2 %v4499_v18  ;;  %v4539_v55 = vld [vmem:[%s5112_s14 + $0x1d8] sm:$0xff]  ;;  %v4522_v57 = vld [vmem:[%s5112_s14 + $0x150] sm:$0xff]  ;;  %v4521_v61 = vld [vmem:[%s5112_s14 + $0x148] sm:$0xff] }
  0x43   : > { %1112 = vmatpush.bf16.msra.mxu3 %v4507_v19  ;;  %v4530_v58 = vld [vmem:[%s5112_s14 + $0x190] sm:$0xff]  ;;  %v4529_v62 = vld [vmem:[%s5112_s14 + $0x188] sm:$0xff]  ;;  %v4512_v0 = vld [vmem:[%s5112_s14 + $0x100] sm:$0xff] }
  0x44   : > { %930 = vmatpush.bf16.msra.mxu0 %v4482_v20  ;;  %v4538_v59 = vld [vmem:[%s5112_s14 + $0x1d0] sm:$0xff]  ;;  %v4537_v63 = vld [vmem:[%s5112_s14 + $0x1c8] sm:$0xff]  ;;  %v4520_v1 = vld [vmem:[%s5112_s14 + $0x140] sm:$0xff] }
  0x45   : > { %991 = vmatpush.bf16.msra.mxu1 %v4490_v21  ;;  %v4528_v2 = vld [vmem:[%s5112_s14 + $0x180] sm:$0xff]  ;;  %v4551_v4 = vld [vmem:[%s5112_s14 + $0x238] sm:$0xff]  ;;  %v4550_v8 = vld [vmem:[%s5112_s14 + $0x230] sm:$0xff] }
  0x46   : > { %1052 = vmatpush.bf16.msra.mxu2 %v4498_v22  ;;  %v4536_v3 = vld [vmem:[%s5112_s14 + $0x1c0] sm:$0xff]  ;;  %v4559_v5 = vld [vmem:[%s5112_s14 + $0x278] sm:$0xff]  ;;  %v4558_v11 = vld [vmem:[%s5112_s14 + $0x270] sm:$0xff] }
  0x47   : > { %1113 = vmatpush.bf16.msra.mxu3 %v4506_v23  ;;  %v4567_v6 = vld [vmem:[%s5112_s14 + $0x2b8] sm:$0xff]  ;;  %v337_v12 = vld [vmem:[%s5154_s15 + $0x10] sm:$0xf]  ;;  %v338_v13 = vld [vmem:[%s5154_s15 + $0x14] sm:$0xf] }
  0x48   : > { %931 = vmatpush.bf16.msra.mxu0 %v4481_v24  ;;  %v4575_v7 = vld [vmem:[%s5112_s14 + $0x2f8] sm:$0xff]  ;;  %v4566_v14 = vld [vmem:[%s5112_s14 + $0x2b0] sm:$0xff]  ;;  %v4549_v16 = vld [vmem:[%s5112_s14 + $0x228] sm:$0xff] }
  0x49   : > { %992 = vmatpush.bf16.msra.mxu1 %v4489_v25  ;;  %v339_v9 = vld [vmem:[%s5154_s15 + $0x18] sm:$0xf]  ;;  %v340_v10 = vld [vmem:[%s5154_s15 + $0x1c] sm:$0xf]  ;;  %v4574_v15 = vld [vmem:[%s5112_s14 + $0x2f0] sm:$0xff] }
  0x4a   : > { %1053 = vmatpush.bf16.msra.mxu2 %v4497_v26  ;;  %v4557_v17 = vld [vmem:[%s5112_s14 + $0x268] sm:$0xff]  ;;  %v4548_v20 = vld [vmem:[%s5112_s14 + $0x220] sm:$0xff]  ;;  %v4547_v24 = vld [vmem:[%s5112_s14 + $0x218] sm:$0xff] }
  0x4b   : > { %1114 = vmatpush.bf16.msra.mxu3 %v4505_v27  ;;  %v4565_v18 = vld [vmem:[%s5112_s14 + $0x2a8] sm:$0xff]  ;;  %v4556_v21 = vld [vmem:[%s5112_s14 + $0x260] sm:$0xff]  ;;  %v4555_v25 = vld [vmem:[%s5112_s14 + $0x258] sm:$0xff] }
  0x4c   : > { %932 = vmatpush.bf16.msra.mxu0 %v4480_v28  ;;  %v4573_v19 = vld [vmem:[%s5112_s14 + $0x2e8] sm:$0xff]  ;;  %v4564_v22 = vld [vmem:[%s5112_s14 + $0x2a0] sm:$0xff]  ;;  %v4563_v26 = vld [vmem:[%s5112_s14 + $0x298] sm:$0xff] }
  0x4d   : > { %993 = vmatpush.bf16.msra.mxu1 %v4488_v29  ;;  %v4572_v23 = vld [vmem:[%s5112_s14 + $0x2e0] sm:$0xff]  ;;  %v4571_v27 = vld [vmem:[%s5112_s14 + $0x2d8] sm:$0xff]  ;;  %v4546_v28 = vld [vmem:[%s5112_s14 + $0x210] sm:$0xff] }
  0x4e   : > { %1054 = vmatpush.bf16.msra.mxu2 %v4496_v30  ;;  %v4554_v29 = vld [vmem:[%s5112_s14 + $0x250] sm:$0xff] }
  0x4f   : > { %1115 = vmatpush.bf16.msra.mxu3 %v4504_v31  ;;  %933 = vmatmul.bf16.vlgmr.msra.gmra.mxu0 %v333_v40  ;;  %v4562_v30 = vld [vmem:[%s5112_s14 + $0x290] sm:$0xff]  ;;  %v4583_v40 = vld [vmem:[%s5112_s14 + $0x338] sm:$0xff] }
  0x50   : > { %1169 = vmatpush.bf16.msrb.mxu0 %v4519_v32  ;;  %994 = vmatmul.bf16.vlgmr.msra.gmra.mxu1 %v334_v41  ;;  %v4570_v31 = vld [vmem:[%s5112_s14 + $0x2d0] sm:$0xff]  ;;  %v4545_v32 = vld [vmem:[%s5112_s14 + $0x208] sm:$0xff]  ;;  %v4591_v41 = vld [vmem:[%s5112_s14 + $0x378] sm:$0xff] }
  0x51   : > { %1230 = vmatpush.bf16.msrb.mxu1 %v4527_v33  ;;  %1055 = vmatmul.bf16.vlgmr.msra.gmra.mxu2 %v335_v37  ;;  %v4553_v33 = vld [vmem:[%s5112_s14 + $0x248] sm:$0xff]  ;;  %v4552_v37 = vld [vmem:[%s5112_s14 + $0x240] sm:$0xff] }
  0x52   : > { %1291 = vmatpush.bf16.msrb.mxu2 %v4535_v34  ;;  %1116 = vmatmul.bf16.vlgmr.msra.gmra.mxu3 %v336_v38  ;;  %v4561_v34 = vld [vmem:[%s5112_s14 + $0x288] sm:$0xff]  ;;  %v4560_v38 = vld [vmem:[%s5112_s14 + $0x280] sm:$0xff] }
  0x53   : > { %1352 = vmatpush.bf16.msrb.mxu3 %v4543_v35  ;;  %v4569_v35 = vld [vmem:[%s5112_s14 + $0x2c8] sm:$0xff] }
  0x54   : > { %1170 = vmatpush.bf16.msrb.mxu0 %v4518_v36  ;;  %v4544_v36 = vld [vmem:[%s5112_s14 + $0x200] sm:$0xff] }
  0x55   : > { %1231 = vmatpush.bf16.msrb.mxu1 %v4526_v39  ;;  %v4568_v39 = vld [vmem:[%s5112_s14 + $0x2c0] sm:$0xff] }
  0x56   : > { %1292 = vmatpush.bf16.msrb.mxu2 %v4534_v42  ;;  %v4599_v42 = vld [vmem:[%s5112_s14 + $0x3b8] sm:$0xff] }
  0x57   : > { %1353 = vmatpush.bf16.msrb.mxu3 %v4542_v43  ;;  %v4607_v43 = vld [vmem:[%s5112_s14 + $0x3f8] sm:$0xff] }
  0x58   : > { %1171 = vmatpush.bf16.msrb.mxu0 %v4517_v44  ;;  %v4582_v44 = vld [vmem:[%s5112_s14 + $0x330] sm:$0xff] }
  0x59   : > { %1232 = vmatpush.bf16.msrb.mxu1 %v4525_v45  ;;  %v343_v45 = vld [vmem:[%s5154_s15 + $0x28] sm:$0xf] }
  0x5a   : > { %1293 = vmatpush.bf16.msrb.mxu2 %v4533_v46  ;;  %v344_v46 = vld [vmem:[%s5154_s15 + $0x2c] sm:$0xf] }
  0x5b   : > { %1354 = vmatpush.bf16.msrb.mxu3 %v4541_v47  ;;  %v4590_v47 = vld [vmem:[%s5112_s14 + $0x370] sm:$0xff] }
  0x5c   : > { %1172 = vmatpush.bf16.msrb.mxu0 %v4516_v48  ;;  %v341_v48 = vld [vmem:[%s5154_s15 + $0x20] sm:$0xf] }
  0x5d   : > { %1233 = vmatpush.bf16.msrb.mxu1 %v4524_v49  ;;  %v342_v49 = vld [vmem:[%s5154_s15 + $0x24] sm:$0xf] }
  0x5e   : > { %1294 = vmatpush.bf16.msrb.mxu2 %v4532_v50  ;;  %v4598_v50 = vld [vmem:[%s5112_s14 + $0x3b0] sm:$0xff] }
  0x5f   : > { %1355 = vmatpush.bf16.msrb.mxu3 %v4540_v51  ;;  %v4606_v51 = vld [vmem:[%s5112_s14 + $0x3f0] sm:$0xff] }
  0x60   : > { %1173 = vmatpush.bf16.msrb.mxu0 %v4515_v52  ;;  %v4581_v52 = vld [vmem:[%s5112_s14 + $0x328] sm:$0xff] }
  0x61   : > { %1234 = vmatpush.bf16.msrb.mxu1 %v4523_v53  ;;  %v4589_v53 = vld [vmem:[%s5112_s14 + $0x368] sm:$0xff] }
  0x62   : > { %1295 = vmatpush.bf16.msrb.mxu2 %v4531_v54  ;;  %v4597_v54 = vld [vmem:[%s5112_s14 + $0x3a8] sm:$0xff] }
  0x63   : > { %1356 = vmatpush.bf16.msrb.mxu3 %v4539_v55  ;;  %v4605_v55 = vld [vmem:[%s5112_s14 + $0x3e8] sm:$0xff] }
  0x64   : > { %1174 = vmatpush.bf16.msrb.mxu0 %v4514_v56  ;;  %v4580_v56 = vld [vmem:[%s5112_s14 + $0x320] sm:$0xff] }
  0x65   : > { %1235 = vmatpush.bf16.msrb.mxu1 %v4522_v57  ;;  %v4588_v57 = vld [vmem:[%s5112_s14 + $0x360] sm:$0xff] }
  0x66   : > { %1296 = vmatpush.bf16.msrb.mxu2 %v4530_v58  ;;  %v4596_v58 = vld [vmem:[%s5112_s14 + $0x3a0] sm:$0xff] }
  0x67   : > { %1357 = vmatpush.bf16.msrb.mxu3 %v4538_v59  ;;  %v4604_v59 = vld [vmem:[%s5112_s14 + $0x3e0] sm:$0xff] }
  0x68   : > { %1175 = vmatpush.bf16.msrb.mxu0 %v4513_v60  ;;  %v4579_v60 = vld [vmem:[%s5112_s14 + $0x318] sm:$0xff] }
  0x69   : > { %1236 = vmatpush.bf16.msrb.mxu1 %v4521_v61  ;;  %v4587_v61 = vld [vmem:[%s5112_s14 + $0x358] sm:$0xff] }
  0x6a   : > { %1297 = vmatpush.bf16.msrb.mxu2 %v4529_v62  ;;  %v4595_v62 = vld [vmem:[%s5112_s14 + $0x398] sm:$0xff] }
  0x6b   : > { %1358 = vmatpush.bf16.msrb.mxu3 %v4537_v63  ;;  %v4603_v63 = vld [vmem:[%s5112_s14 + $0x3d8] sm:$0xff] }
  0x6c   : > { %1176 = vmatpush.bf16.msrb.mxu0 %v4512_v0  ;;  %v4578_v0 = vld [vmem:[%s5112_s14 + $0x310] sm:$0xff] }
  0x6d   : > { %1237 = vmatpush.bf16.msrb.mxu1 %v4520_v1  ;;  %v4586_v1 = vld [vmem:[%s5112_s14 + $0x350] sm:$0xff] }
  0x6e   : > { %1298 = vmatpush.bf16.msrb.mxu2 %v4528_v2  ;;  %v4594_v2 = vld [vmem:[%s5112_s14 + $0x390] sm:$0xff] }
  0x6f   : > { %1359 = vmatpush.bf16.msrb.mxu3 %v4536_v3  ;;  %1177 = vmatmul.bf16.vlgmr.msrb.gmra.mxu0 %v337_v12  ;;  %v4602_v3 = vld [vmem:[%s5112_s14 + $0x3d0] sm:$0xff]  ;;  %v4615_v12 = vld [vmem:[%s5098_s9 + $0x38] sm:$0xff] }
  0x70   : > { %1413 = vmatpush.bf16.msra.mxu0 %v4551_v4  ;;  %1238 = vmatmul.bf16.vlgmr.msrb.gmra.mxu1 %v338_v13  ;;  %v4577_v4 = vld [vmem:[%s5112_s14 + $0x308] sm:$0xff]  ;;  %v4623_v13 = vld [vmem:[%s5098_s9 + $0x78] sm:$0xff] }
  0x71   : > { %1474 = vmatpush.bf16.msra.mxu1 %v4559_v5  ;;  %1299 = vmatmul.bf16.vlgmr.msrb.gmra.mxu2 %v339_v9  ;;  %v4585_v5 = vld [vmem:[%s5112_s14 + $0x348] sm:$0xff]  ;;  %v4584_v9 = vld [vmem:[%s5112_s14 + $0x340] sm:$0xff] }
  0x72   : > { %1535 = vmatpush.bf16.msra.mxu2 %v4567_v6  ;;  %1360 = vmatmul.bf16.vlgmr.msrb.gmra.mxu3 %v340_v10  ;;  %v4593_v6 = vld [vmem:[%s5112_s14 + $0x388] sm:$0xff]  ;;  %v4592_v10 = vld [vmem:[%s5112_s14 + $0x380] sm:$0xff] }
  0x73   : > { %1596 = vmatpush.bf16.msra.mxu3 %v4575_v7  ;;  %v4601_v7 = vld [vmem:[%s5112_s14 + $0x3c8] sm:$0xff] }
  0x74   : > { %1414 = vmatpush.bf16.msra.mxu0 %v4550_v8  ;;  %v4576_v8 = vld [vmem:[%s5112_s14 + $0x300] sm:$0xff] }
  0x75   : > { %1475 = vmatpush.bf16.msra.mxu1 %v4558_v11  ;;  %v4600_v11 = vld [vmem:[%s5112_s14 + $0x3c0] sm:$0xff] }
  0x76   : > { %1536 = vmatpush.bf16.msra.mxu2 %v4566_v14  ;;  %v4631_v14 = vld [vmem:[%s5098_s9 + $0xb8] sm:$0xff] }
  0x77   : > { %1597 = vmatpush.bf16.msra.mxu3 %v4574_v15  ;;  %v4639_v15 = vld [vmem:[%s5098_s9 + $0xf8] sm:$0xff] }
  0x78   : > { %1415 = vmatpush.bf16.msra.mxu0 %v4549_v16  ;;  %v4614_v16 = vld [vmem:[%s5098_s9 + $0x30] sm:$0xff] }
  0x79   : > { %1476 = vmatpush.bf16.msra.mxu1 %v4557_v17  ;;  %v345_v17 = vld [vmem:[%s5154_s15 + $0x30] sm:$0xf] }
  0x7a   : > { %1537 = vmatpush.bf16.msra.mxu2 %v4565_v18  ;;  %v346_v18 = vld [vmem:[%s5154_s15 + $0x34] sm:$0xf] }
  0x7b   : > { %1598 = vmatpush.bf16.msra.mxu3 %v4573_v19  ;;  %v4622_v19 = vld [vmem:[%s5098_s9 + $0x70] sm:$0xff] }
  0x7c   : > { %1416 = vmatpush.bf16.msra.mxu0 %v4548_v20  ;;  %v347_v20 = vld [vmem:[%s5154_s15 + $0x38] sm:$0xf] }
  0x7d   : > { %1477 = vmatpush.bf16.msra.mxu1 %v4556_v21  ;;  %v348_v21 = vld [vmem:[%s5154_s15 + $0x3c] sm:$0xf] }
  0x7e   : > { %1538 = vmatpush.bf16.msra.mxu2 %v4564_v22  ;;  %v4630_v22 = vld [vmem:[%s5098_s9 + $0xb0] sm:$0xff] }
  0x7f   : > { %1599 = vmatpush.bf16.msra.mxu3 %v4572_v23  ;;  %v4638_v23 = vld [vmem:[%s5098_s9 + $0xf0] sm:$0xff] }
  0x80   : > { %1417 = vmatpush.bf16.msra.mxu0 %v4547_v24  ;;  %v5275_v24 = vld [vmem:[%s5098_s9 + $0x28] sm:$0xff] }
  0x81   : > { %1478 = vmatpush.bf16.msra.mxu1 %v4555_v25  ;;  %v5278_v25 = vld [vmem:[%s5098_s9 + $0x68] sm:$0xff] }
  0x82   : > { %1539 = vmatpush.bf16.msra.mxu2 %v4563_v26  ;;  %v5281_v26 = vld [vmem:[%s5098_s9 + $0xa8] sm:$0xff] }
  0x83   : > { %1600 = vmatpush.bf16.msra.mxu3 %v4571_v27  ;;  %v5284_v27 = vld [vmem:[%s5098_s9 + $0xe8] sm:$0xff] }
  0x84   : > { %1418 = vmatpush.bf16.msra.mxu0 %v4546_v28  ;;  %v5289_v28 = vld [vmem:[%s5098_s9 + $0x20] sm:$0xff] }
  0x85   : > { %1479 = vmatpush.bf16.msra.mxu1 %v4554_v29  ;;  %v5292_v29 = vld [vmem:[%s5098_s9 + $0x60] sm:$0xff] }
  0x86   : > { %1540 = vmatpush.bf16.msra.mxu2 %v4562_v30  ;;  %v5297_v30 = vld [vmem:[%s5098_s9 + $0xa0] sm:$0xff] }
  0x87   : > { %1601 = vmatpush.bf16.msra.mxu3 %v4570_v31  ;;  %v5300_v31 = vld [vmem:[%s5098_s9 + $0xe0] sm:$0xff] }
  0x88   : > { %1419 = vmatpush.bf16.msra.mxu0 %v4545_v32  ;;  %v4611_v32 = vld [vmem:[%s5098_s9 + $0x18] sm:$0xff] }
  0x89   : > { %1480 = vmatpush.bf16.msra.mxu1 %v4553_v33  ;;  %v4619_v33 = vld [vmem:[%s5098_s9 + $0x58] sm:$0xff] }
  0x8a   : > { %1541 = vmatpush.bf16.msra.mxu2 %v4561_v34  ;;  %v5309_v34 = vld [vmem:[%s5098_s9 + $0x98] sm:$0xff] }
  0x8b   : > { %1602 = vmatpush.bf16.msra.mxu3 %v4569_v35  ;;  %v5312_v35 = vld [vmem:[%s5098_s9 + $0xd8] sm:$0xff] }
  0x8c   : > { %1420 = vmatpush.bf16.msra.mxu0 %v4544_v36  ;;  %v5315_v36 = vld [vmem:[%s5098_s9 + $0x10] sm:$0xff] }
  0x8d   : > { %1481 = vmatpush.bf16.msra.mxu1 %v4552_v37  ;;  %v5318_v37 = vld [vmem:[%s5098_s9 + $0x50] sm:$0xff] }
  0x8e   : > { %1542 = vmatpush.bf16.msra.mxu2 %v4560_v38  ;;  %v5323_v38 = vld [vmem:[%s5098_s9 + $0x90] sm:$0xff] }
  0x8f   : > { %1603 = vmatpush.bf16.msra.mxu3 %v4568_v39  ;;  %1421 = vmatmul.bf16.vlgmr.msra.gmra.mxu0 %v341_v48  ;;  %v5326_v39 = vld [vmem:[%s5098_s9 + $0xd0] sm:$0xff]  ;;  %v5368_v48 = vld [vmem:[%s5098_s9 + $0x138] sm:$0xff] }
  0x90   : > { %1657 = vmatpush.bf16.msrb.mxu0 %v4583_v40  ;;  %1482 = vmatmul.bf16.vlgmr.msra.gmra.mxu1 %v342_v49  ;;  %v5331_v40 = vld [vmem:[%s5098_s9 + $0x8] sm:$0xff]  ;;  %v5371_v49 = vld [vmem:[%s5098_s9 + $0x178] sm:$0xff] }
  0x91   : > { %1718 = vmatpush.bf16.msrb.mxu1 %v4591_v41  ;;  %1543 = vmatmul.bf16.vlgmr.msra.gmra.mxu2 %v343_v45  ;;  %v5334_v41 = vld [vmem:[%s5098_s9 + $0x48] sm:$0xff]  ;;  %v5350_v45 = vld [vmem:[%s5098_s9 + $0x40] sm:$0xff]  ;;  %6361 = vst [vmem:[#allocation5_spill] sm:$0xff] %v5371_v49 }
  0x92   : > { %1779 = vmatpush.bf16.msrb.mxu2 %v4599_v42  ;;  %1604 = vmatmul.bf16.vlgmr.msra.gmra.mxu3 %v344_v46  ;;  %v5339_v42 = vld [vmem:[%s5098_s9 + $0x88] sm:$0xff]  ;;  %v5355_v46 = vld [vmem:[%s5098_s9 + $0x80] sm:$0xff] }
  0x93   : > { %1840 = vmatpush.bf16.msrb.mxu3 %v4607_v43  ;;  %v5342_v43 = vld [vmem:[%s5098_s9 + $0xc8] sm:$0xff] }
  0x94   : > { %1658 = vmatpush.bf16.msrb.mxu0 %v4582_v44  ;;  %v5347_v44 = vld [vmem:[%s5098_s9] sm:$0xff] }
  0x95   : > { %1719 = vmatpush.bf16.msrb.mxu1 %v4590_v47  ;;  %v5358_v47 = vld [vmem:[%s5098_s9 + $0xc0] sm:$0xff] }
  0x96   : > { %1780 = vmatpush.bf16.msrb.mxu2 %v4598_v50  ;;  %v5374_v50 = vld [vmem:[%s5098_s9 + $0x1b8] sm:$0xff] }
  0x97   : > { %1841 = vmatpush.bf16.msrb.mxu3 %v4606_v51  ;;  %6362 = vst [vmem:[#allocation6_spill] sm:$0xff] %v5374_v50  ;;  %v5377_v51 = vld [vmem:[%s5098_s9 + $0x1f8] sm:$0xff] }
  0x98   : > { %1659 = vmatpush.bf16.msrb.mxu0 %v4581_v52  ;;  %6363 = vst [vmem:[#allocation7_spill] sm:$0xff] %v5377_v51  ;;  %v5384_v52 = vld [vmem:[%s5365_s18] sm:$0xf] }
  0x99   : > { %1720 = vmatpush.bf16.msrb.mxu1 %v4589_v53  ;;  %v5387_v53 = vld [vmem:[%s5365_s18 + $0x4] sm:$0xf] }
  0x9a   : > { %1781 = vmatpush.bf16.msrb.mxu2 %v4597_v54  ;;  %v5390_v54 = vld [vmem:[%s5365_s18 + $0x8] sm:$0xf] }
  0x9b   : > { %1842 = vmatpush.bf16.msrb.mxu3 %v4605_v55  ;;  %v5395_v55 = vld [vmem:[%s5365_s18 + $0xc] sm:$0xf] }
  0x9c   : > { %1660 = vmatpush.bf16.msrb.mxu0 %v4580_v56  ;;  %v5398_v56 = vld [vmem:[%s5098_s9 + $0x130] sm:$0xff] }
  0x9d   : > { %1721 = vmatpush.bf16.msrb.mxu1 %v4588_v57  ;;  %6364 = vst [vmem:[#allocation8_spill] sm:$0xff] %v5398_v56  ;;  %v5401_v57 = vld [vmem:[%s5098_s9 + $0x170] sm:$0xff] }
  0x9e   : > { %1782 = vmatpush.bf16.msrb.mxu2 %v4596_v58  ;;  %6365 = vst [vmem:[#allocation9_spill] sm:$0xff] %v5401_v57  ;;  %v5406_v58 = vld [vmem:[%s5098_s9 + $0x1b0] sm:$0xff] }
  0x9f   : > { %1843 = vmatpush.bf16.msrb.mxu3 %v4604_v59  ;;  %6366 = vst [vmem:[#allocation10_spill] sm:$0xff] %v5406_v58  ;;  %v5409_v59 = vld [vmem:[%s5098_s9 + $0x1f0] sm:$0xff] }
  0xa0   : > { %1661 = vmatpush.bf16.msrb.mxu0 %v4579_v60  ;;  %6367 = vst [vmem:[#allocation11_spill] sm:$0xff] %v5409_v59  ;;  %v5418_v60 = vld [vmem:[%s5098_s9 + $0x128] sm:$0xff] }
  0xa1   : > { %1722 = vmatpush.bf16.msrb.mxu1 %v4587_v61  ;;  %6368 = vst [vmem:[#allocation12_spill] sm:$0xff] %v5418_v60  ;;  %v5421_v61 = vld [vmem:[%s5098_s9 + $0x168] sm:$0xff] }
  0xa2   : > { %1783 = vmatpush.bf16.msrb.mxu2 %v4595_v62  ;;  %6369 = vst [vmem:[#allocation13_spill] sm:$0xff] %v5421_v61  ;;  %v5426_v62 = vld [vmem:[%s5098_s9 + $0x1a8] sm:$0xff] }
  0xa3   : > { %1844 = vmatpush.bf16.msrb.mxu3 %v4603_v63  ;;  %6370 = vst [vmem:[#allocation14_spill] sm:$0xff] %v5426_v62  ;;  %v5429_v63 = vld [vmem:[%s5098_s9 + $0x1e8] sm:$0xff] }
  0xa4   : > { %1662 = vmatpush.bf16.msrb.mxu0 %v4578_v0  ;;  %6371 = vst [vmem:[#allocation15_spill] sm:$0xff] %v5429_v63  ;;  %v5434_v0 = vld [vmem:[%s5098_s9 + $0x120] sm:$0xff] }
  0xa5   : > { %1723 = vmatpush.bf16.msrb.mxu1 %v4586_v1  ;;  %6372 = vst [vmem:[#allocation16_spill] sm:$0xff] %v5434_v0  ;;  %v5437_v1 = vld [vmem:[%s5098_s9 + $0x160] sm:$0xff] }
  0xa6   : > { %1784 = vmatpush.bf16.msrb.mxu2 %v4594_v2  ;;  %6373 = vst [vmem:[#allocation17_spill] sm:$0xff] %v5437_v1 }
  0xa7   : > { %1845 = vmatpush.bf16.msrb.mxu3 %v4602_v3 }
  0xa8   : > { %1663 = vmatpush.bf16.msrb.mxu0 %v4577_v4  ;;  %v5446_v4 = vld [vmem:[%s5098_s9 + $0x1a0] sm:$0xff] }
  0xa9   : > { %1724 = vmatpush.bf16.msrb.mxu1 %v4585_v5  ;;  %6374 = vst [vmem:[#allocation18_spill] sm:$0xff] %v5446_v4  ;;  %v5449_v5 = vld [vmem:[%s5098_s9 + $0x1e0] sm:$0xff] }
  0xaa   : > { %1785 = vmatpush.bf16.msrb.mxu2 %v4593_v6  ;;  %6375 = vst [vmem:[#allocation19_spill] sm:$0xff] %v5449_v5  ;;  %v5454_v6 = vld [vmem:[%s5098_s9 + $0x118] sm:$0xff] }
  0xab   : > { %1846 = vmatpush.bf16.msrb.mxu3 %v4601_v7  ;;  %6376 = vst [vmem:[#allocation20_spill] sm:$0xff] %v5454_v6  ;;  %v5457_v7 = vld [vmem:[%s5098_s9 + $0x158] sm:$0xff] }
  0xac   : > { %1664 = vmatpush.bf16.msrb.mxu0 %v4576_v8  ;;  %6377 = vst [vmem:[#allocation21_spill] sm:$0xff] %v5457_v7  ;;  %v5462_v8 = vld [vmem:[%s5098_s9 + $0x198] sm:$0xff] }
  0xad   : > { %1725 = vmatpush.bf16.msrb.mxu1 %v4584_v9  ;;  %6378 = vst [vmem:[#allocation22_spill] sm:$0xff] %v5462_v8  ;;  %v5465_v9 = vld [vmem:[%s5098_s9 + $0x1d8] sm:$0xff] }
  0xae   : > { %1786 = vmatpush.bf16.msrb.mxu2 %v4592_v10  ;;  %6379 = vst [vmem:[#allocation23_spill] sm:$0xff] %v5465_v9 }
  0xaf   : > { %1847 = vmatpush.bf16.msrb.mxu3 %v4600_v11  ;;  %1665 = vmatmul.bf16.vlgmr.msrb.gmra.mxu0 %v345_v17  ;;  %v5485_v17 = vld [vmem:[%s5098_s9 + $0x1d0] sm:$0xff] }
  0xb0   : > { %1901 = vmatpush.bf16.msra.mxu0 %v4615_v12  ;;  %1726 = vmatmul.bf16.vlgmr.msrb.gmra.mxu1 %v346_v18  ;;  %v5474_v12 = vld [vmem:[%s5098_s9 + $0x110] sm:$0xff]  ;;  %6383 = vst [vmem:[#allocation27_spill] sm:$0xff] %v5485_v17  ;;  %v5490_v18 = vld [vmem:[%s5098_s9 + $0x108] sm:$0xff] }
  0xb1   : > { %1962 = vmatpush.bf16.msra.mxu1 %v4623_v13  ;;  %1787 = vmatmul.bf16.vlgmr.msrb.gmra.mxu2 %v347_v20  ;;  %6380 = vst [vmem:[#allocation24_spill] sm:$0xff] %v5474_v12  ;;  %v5477_v13 = vld [vmem:[%s5098_s9 + $0x150] sm:$0xff]  ;;  %v5498_v20 = vld [vmem:[%s5098_s9 + $0x188] sm:$0xff] }
  0xb2   : > { %2023 = vmatpush.bf16.msra.mxu2 %v4631_v14  ;;  %1848 = vmatmul.bf16.vlgmr.msrb.gmra.mxu3 %v348_v21  ;;  %6381 = vst [vmem:[#allocation25_spill] sm:$0xff] %v5477_v13  ;;  %v5501_v21 = vld [vmem:[%s5098_s9 + $0x1c8] sm:$0xff] }
  0xb3   : > { %2084 = vmatpush.bf16.msra.mxu3 %v4639_v15  ;;  %6384 = vst [vmem:[#allocation28_spill] sm:$0xff] %v5490_v18 }
  0xb4   : > { %1902 = vmatpush.bf16.msra.mxu0 %v4614_v16  ;;  %v5482_v16 = vld [vmem:[%s5098_s9 + $0x190] sm:$0xff]  ;;  %6386 = vst [vmem:[#allocation30_spill] sm:$0xff] %v5498_v20 }
  0xb5   : > { %1963 = vmatpush.bf16.msra.mxu1 %v4622_v19  ;;  %6382 = vst [vmem:[#allocation26_spill] sm:$0xff] %v5482_v16  ;;  %v5493_v19 = vld [vmem:[%s5098_s9 + $0x148] sm:$0xff] }
  0xb6   : > { %2024 = vmatpush.bf16.msra.mxu2 %v4630_v22  ;;  %6385 = vst [vmem:[#allocation29_spill] sm:$0xff] %v5493_v19 }
  0xb7   : > { %2085 = vmatpush.bf16.msra.mxu3 %v4638_v23  ;;  %6387 = vst [vmem:[#allocation31_spill] sm:$0xff] %v5501_v21 }
  0xb8   : > { %1903 = vmatpush.bf16.msra.mxu0 %v5275_v24 }
  0xb9   : > { %1964 = vmatpush.bf16.msra.mxu1 %v5278_v25 }
  0xba   : > { %2025 = vmatpush.bf16.msra.mxu2 %v5281_v26 }
  0xbb   : > { %2086 = vmatpush.bf16.msra.mxu3 %v5284_v27 }
  0xbc   : > { %1904 = vmatpush.bf16.msra.mxu0 %v5289_v28 }
  0xbd   : > { %1965 = vmatpush.bf16.msra.mxu1 %v5292_v29 }
  0xbe   : > { %2026 = vmatpush.bf16.msra.mxu2 %v5297_v30 }
  0xbf   : > { %2087 = vmatpush.bf16.msra.mxu3 %v5300_v31 }
  0xc0   : > { %1905 = vmatpush.bf16.msra.mxu0 %v4611_v32  ;;  %v5506_v32 = vld [vmem:[%s5098_s9 + $0x100] sm:$0xff] }
  0xc1   : > { %1966 = vmatpush.bf16.msra.mxu1 %v4619_v33  ;;  %6388 = vst [vmem:[#allocation32_spill] sm:$0xff] %v5506_v32  ;;  %v5509_v33 = vld [vmem:[%s5098_s9 + $0x140] sm:$0xff] }
  0xc2   : > { %2027 = vmatpush.bf16.msra.mxu2 %v5309_v34  ;;  %6389 = vst [vmem:[#allocation33_spill] sm:$0xff] %v5509_v33 }
  0xc3   : > { %2088 = vmatpush.bf16.msra.mxu3 %v5312_v35 }
  0xc4   : > { %1906 = vmatpush.bf16.msra.mxu0 %v5315_v36 }
  0xc5   : > { %1967 = vmatpush.bf16.msra.mxu1 %v5318_v37 }
  0xc6   : > { %2028 = vmatpush.bf16.msra.mxu2 %v5323_v38 }
  0xc7   : > { %2089 = vmatpush.bf16.msra.mxu3 %v5326_v39 }
  0xc8   : > { %1907 = vmatpush.bf16.msra.mxu0 %v5331_v40 }
  0xc9   : > { %1968 = vmatpush.bf16.msra.mxu1 %v5334_v41 }
  0xca   : > { %2029 = vmatpush.bf16.msra.mxu2 %v5339_v42 }
  0xcb   : > { %2090 = vmatpush.bf16.msra.mxu3 %v5342_v43 }
  0xcc   : > { %1908 = vmatpush.bf16.msra.mxu0 %v5347_v44  ;;  %v5439_v2 = vpop.f32.mrf.mxu0 }
  0xcd   : > { %1969 = vmatpush.bf16.msra.mxu1 %v5350_v45  ;;  %v5441_v3 = vpop.f32.mrf.mxu1 }
  0xce   : > { %2030 = vmatpush.bf16.msra.mxu2 %v5355_v46 }
  0xcf   : > { %2091 = vmatpush.bf16.msra.mxu3 %v5358_v47  ;;  %1909 = vmatmul.bf16.vlgmr.msra.gmra.mxu0 %v5384_v52 }
  0xd0   : > { %2145 = vmatpush.bf16.msrb.mxu0 %v5368_v48  ;;  %1970 = vmatmul.bf16.vlgmr.msra.gmra.mxu1 %v5387_v53 }
  0xd1   : > { %2206 = vmatpush.bf16.msrb.mxu1 %v5371_v49  ;;  %2031 = vmatmul.bf16.vlgmr.msra.gmra.mxu2 %v5390_v54  ;;  %v4801_v49 = vld [vmem:[%s5112_s14 + $0x8] sm:$0xff] }
  0xd2   : > { %2267 = vmatpush.bf16.msrb.mxu2 %v5374_v50  ;;  %2092 = vmatmul.bf16.vlgmr.msra.gmra.mxu3 %v5395_v55  ;;  %v4798_v50 = vld [vmem:[%s5112_s14 + $0x50] sm:$0xff] }
  0xd3   : > { %2328 = vmatpush.bf16.msrb.mxu3 %v5377_v51  ;;  %v4793_v51 = vld [vmem:[%s5112_s14 + $0x18] sm:$0xff] }
  0xd4   : > { %2146 = vmatpush.bf16.msrb.mxu0 %v5398_v56  ;;  %v5467_v10 = vpop.f32.mrf.mxu2  ;;  %v936_v14 = vpop.f32.mrf.mxu0  ;;  %v4792_v56 = vld [vmem:[%s5112_s14 + $0xe0] sm:$0xff] }
  0xd5   : > { %2207 = vmatpush.bf16.msrb.mxu1 %v5401_v57  ;;  %v5469_v11 = vpop.f32.mrf.mxu3  ;;  %v997_v15 = vpop.f32.mrf.mxu1  ;;  %v5514_v14 = vld [vmem:[%s5098_s9 + $0x180] sm:$0xff]  ;;  %v4787_v57 = vld [vmem:[%s5112_s14 + $0xa8] sm:$0xff] }
  0xd6   : > { %2268 = vmatpush.bf16.msrb.mxu2 %v5406_v58  ;;  %6390 = vst [vmem:[#allocation34_spill] sm:$0xff] %v5514_v14  ;;  %v5517_v15 = vld [vmem:[%s5098_s9 + $0x1c0] sm:$0xff]  ;;  %v4786_v58 = vld [vmem:[%s5112_s14 + $0x68] sm:$0xff] }
  0xd7   : > { %2329 = vmatpush.bf16.msrb.mxu3 %v5409_v59  ;;  %6391 = vst [vmem:[#allocation35_spill] sm:$0xff] %v5517_v15  ;;  %v4785_v59 = vld [vmem:[%s5112_s14 + $0x28] sm:$0xff] }
  0xd8   : > { %2147 = vmatpush.bf16.msrb.mxu0 %v5418_v60  ;;  %v5789_v60 = vld [vmem:[%s5098_s9 + $0x3d0] sm:$0xff] }
  0xd9   : > { %2208 = vmatpush.bf16.msrb.mxu1 %v5421_v61  ;;  %v5786_v61 = vld [vmem:[%s5098_s9 + $0x390] sm:$0xff]  ;;  %6447 = vst [vmem:[#allocation91_spill] sm:$0xff] %v5789_v60 }
  0xda   : > { %2269 = vmatpush.bf16.msrb.mxu2 %v5426_v62  ;;  %6446 = vst [vmem:[#allocation90_spill] sm:$0xff] %v5786_v61 }
  0xdb   : > { %2330 = vmatpush.bf16.msrb.mxu3 %v5429_v63 }
  0xdc   : > { %2148 = vmatpush.bf16.msrb.mxu0 %v5434_v0  ;;  %v1058_v22 = vpop.f32.mrf.mxu2  ;;  %v5761_v0 = vld [vmem:[%s5098_s9 + $0x358] sm:$0xff] }
  0xdd   : > { %2209 = vmatpush.bf16.msrb.mxu1 %v5437_v1  ;;  %v1119_v23 = vpop.f32.mrf.mxu3  ;;  %v5520_v22 = vld [vmem:[%s5098_s9 + $0x238] sm:$0xff]  ;;  %6441 = vst [vmem:[#allocation85_spill] sm:$0xff] %v5761_v0 }
  0xde   : > { %2270 = vmatpush.bf16.msrb.mxu2 %v5446_v4  ;;  %6392 = vst [vmem:[#allocation36_spill] sm:$0xff] %v5520_v22  ;;  %v5523_v23 = vld [vmem:[%s5098_s9 + $0x278] sm:$0xff]  ;;  %v5699_v4 = vld [vmem:[%s5365_s18 + $0x2c] sm:$0xf] }
  0xdf   : > { %2331 = vmatpush.bf16.msrb.mxu3 %v5449_v5  ;;  %6393 = vst [vmem:[#allocation37_spill] sm:$0xff] %v5523_v23  ;;  %v5694_v5 = vld [vmem:[%s5365_s18 + $0x28] sm:$0xf] }
  0xe0   : > { %2149 = vmatpush.bf16.msrb.mxu0 %v5454_v6  ;;  %v5637_v6 = vld [vmem:[%s5098_s9 + $0x2d0] sm:$0xff] }
  0xe1   : > { %2210 = vmatpush.bf16.msrb.mxu1 %v5457_v7  ;;  %v5634_v7 = vld [vmem:[%s5098_s9 + $0x290] sm:$0xff]  ;;  %6415 = vst [vmem:[#allocation59_spill] sm:$0xff] %v5637_v6 }
  0xe2   : > { %2271 = vmatpush.bf16.msrb.mxu2 %v5462_v8  ;;  %6414 = vst [vmem:[#allocation58_spill] sm:$0xff] %v5634_v7 }
  0xe3   : > { %2332 = vmatpush.bf16.msrb.mxu3 %v5465_v9 }
  0xe4   : > { %2150 = vmatpush.bf16.msrb.mxu0 %v5474_v12  ;;  %v5609_v12 = vld [vmem:[%s5098_s9 + $0x258] sm:$0xff] }
  0xe5   : > { %2211 = vmatpush.bf16.msrb.mxu1 %v5477_v13  ;;  %6409 = vst [vmem:[#allocation53_spill] sm:$0xff] %v5609_v12 }
  0xe6   : > { %2272 = vmatpush.bf16.msrb.mxu2 %v5482_v16  ;;  %v5547_v16 = vld [vmem:[%s5365_s18 + $0x1c] sm:$0xf] }
  0xe7   : > { %2333 = vmatpush.bf16.msrb.mxu3 %v5485_v17  ;;  %v5542_v17 = vld [vmem:[%s5365_s18 + $0x18] sm:$0xf] }
  0xe8   : > { %2151 = vmatpush.bf16.msrb.mxu0 %v5490_v18  ;;  %v5529_v18 = vld [vmem:[%s5098_s9 + $0x2f8] sm:$0xff] }
  0xe9   : > { %2212 = vmatpush.bf16.msrb.mxu1 %v5493_v19  ;;  %v5526_v19 = vld [vmem:[%s5098_s9 + $0x2b8] sm:$0xff]  ;;  %6395 = vst [vmem:[#allocation39_spill] sm:$0xff] %v5529_v18 }
  0xea   : > { %2273 = vmatpush.bf16.msrb.mxu2 %v5498_v20  ;;  %6394 = vst [vmem:[#allocation38_spill] sm:$0xff] %v5526_v19  ;;  %v5539_v20 = vld [vmem:[%s5365_s18 + $0x14] sm:$0xf] }
  0xeb   : > { %2334 = vmatpush.bf16.msrb.mxu3 %v5501_v21  ;;  %v5536_v21 = vld [vmem:[%s5365_s18 + $0x10] sm:$0xf] }
  0xec   : > { %2152 = vmatpush.bf16.msrb.mxu0 %v5506_v32  ;;  %v5550_v32 = vld [vmem:[%s5098_s9 + $0x230] sm:$0xff]  ;;  %v5591_v13 = vpop.f32.mrf.mxu0 }
  0xed   : > { %2213 = vmatpush.bf16.msrb.mxu1 %v5509_v33  ;;  %6396 = vst [vmem:[#allocation40_spill] sm:$0xff] %v5550_v32  ;;  %v5561_v33 = vld [vmem:[%s5098_s9 + $0x2f0] sm:$0xff] }
  0xee   : > { %2274 = vmatpush.bf16.msrb.mxu2 %v5514_v14  ;;  %v5553_v14 = vld [vmem:[%s5098_s9 + $0x270] sm:$0xff]  ;;  %6399 = vst [vmem:[#allocation43_spill] sm:$0xff] %v5561_v33 }
  0xef   : > { %2335 = vmatpush.bf16.msrb.mxu3 %v5517_v15  ;;  %6397 = vst [vmem:[#allocation41_spill] sm:$0xff] %v5553_v14  ;;  %v5558_v15 = vld [vmem:[%s5098_s9 + $0x2b0] sm:$0xff]  ;;  %2153 = vmatmul.bf16.vlgmr.msrb.gmra.mxu0 %v5536_v21 }
  0xf0   : > { %2389 = vmatpush.bf16.msra.mxu0 %v5520_v22  ;;  %6398 = vst [vmem:[#allocation42_spill] sm:$0xff] %v5558_v15  ;;  %2214 = vmatmul.bf16.vlgmr.msrb.gmra.mxu1 %v5539_v20  ;;  %v5581_v22 = vld [vmem:[%s5098_s9 + $0x2e8] sm:$0xff] }
  0xf1   : > { %2450 = vmatpush.bf16.msra.mxu1 %v5523_v23  ;;  %2275 = vmatmul.bf16.vlgmr.msrb.gmra.mxu2 %v5542_v17  ;;  %v5578_v23 = vld [vmem:[%s5098_s9 + $0x2a8] sm:$0xff]  ;;  %6403 = vst [vmem:[#allocation47_spill] sm:$0xff] %v5581_v22 }
  0xf2   : > { %2511 = vmatpush.bf16.msra.mxu2 %v5526_v19  ;;  %2336 = vmatmul.bf16.vlgmr.msrb.gmra.mxu3 %v5547_v16  ;;  %v5573_v19 = vld [vmem:[%s5098_s9 + $0x268] sm:$0xff]  ;;  %6402 = vst [vmem:[#allocation46_spill] sm:$0xff] %v5578_v23 }
  0xf3   : > { %2572 = vmatpush.bf16.msra.mxu3 %v5529_v18  ;;  %v5570_v18 = vld [vmem:[%s5098_s9 + $0x228] sm:$0xff]  ;;  %6401 = vst [vmem:[#allocation45_spill] sm:$0xff] %v5573_v19 }
  0xf4   : > { %2390 = vmatpush.bf16.msra.mxu0 %v5550_v32  ;;  %6400 = vst [vmem:[#allocation44_spill] sm:$0xff] %v5570_v18  ;;  %v5589_v32 = vld [vmem:[%s5098_s9 + $0x260] sm:$0xff]  ;;  %v5619_v9 = vpop.f32.mrf.mxu2 }
  0xf5   : > { %2451 = vmatpush.bf16.msra.mxu1 %v5553_v14  ;;  %v5586_v14 = vld [vmem:[%s5098_s9 + $0x220] sm:$0xff]  ;;  %6405 = vst [vmem:[#allocation49_spill] sm:$0xff] %v5589_v32 }
  0xf6   : > { %2512 = vmatpush.bf16.msra.mxu2 %v5558_v15  ;;  %6404 = vst [vmem:[#allocation48_spill] sm:$0xff] %v5586_v14  ;;  %v5593_v15 = vpop.f32.mrf.mxu1 }
  0xf7   : > { %2573 = vmatpush.bf16.msra.mxu3 %v5561_v33  ;;  %v5598_v33 = vld [vmem:[%s5098_s9 + $0x2a0] sm:$0xff] }
  0xf8   : > { %2391 = vmatpush.bf16.msra.mxu0 %v5570_v18  ;;  %6406 = vst [vmem:[#allocation50_spill] sm:$0xff] %v5598_v33  ;;  %v5601_v18 = vld [vmem:[%s5098_s9 + $0x2e0] sm:$0xff] }
  0xf9   : > { %2452 = vmatpush.bf16.msra.mxu1 %v5573_v19  ;;  %6407 = vst [vmem:[#allocation51_spill] sm:$0xff] %v5601_v18  ;;  %v5606_v19 = vld [vmem:[%s5098_s9 + $0x218] sm:$0xff] }
  0xfa   : > { %2513 = vmatpush.bf16.msra.mxu2 %v5578_v23  ;;  %6408 = vst [vmem:[#allocation52_spill] sm:$0xff] %v5606_v19  ;;  %v5617_v23 = vld [vmem:[%s5098_s9 + $0x2d8] sm:$0xff] }
  0xfb   : > { %2574 = vmatpush.bf16.msra.mxu3 %v5581_v22  ;;  %v5614_v22 = vld [vmem:[%s5098_s9 + $0x298] sm:$0xff]  ;;  %6411 = vst [vmem:[#allocation55_spill] sm:$0xff] %v5617_v23 }
  0xfc   : > { %2392 = vmatpush.bf16.msra.mxu0 %v5586_v14  ;;  %6410 = vst [vmem:[#allocation54_spill] sm:$0xff] %v5614_v22  ;;  %v5621_v14 = vpop.f32.mrf.mxu3 }
  0xfd   : > { %2453 = vmatpush.bf16.msra.mxu1 %v5589_v32  ;;  %v5626_v32 = vld [vmem:[%s5098_s9 + $0x210] sm:$0xff] }
  0xfe   : > { %2514 = vmatpush.bf16.msra.mxu2 %v5598_v33  ;;  %6412 = vst [vmem:[#allocation56_spill] sm:$0xff] %v5626_v32  ;;  %v5629_v33 = vld [vmem:[%s5098_s9 + $0x250] sm:$0xff]  ;;  %v1241_v8 = vpop.f32.mrf.mxu1 }
  0xff   : > { %2575 = vmatpush.bf16.msra.mxu3 %v5601_v18  ;;  %6413 = vst [vmem:[#allocation57_spill] sm:$0xff] %v5629_v33  ;;  %v1180_v18 = vpop.f32.mrf.mxu0  ;;  %v5645_v8 = vld [vmem:[%s5098_s9 + $0x248] sm:$0xff] }
 0x100   : > { %2393 = vmatpush.bf16.msra.mxu0 %v5606_v19  ;;  %6417 = vst [vmem:[#allocation61_spill] sm:$0xff] %v5645_v8  ;;  %v5650_v18 = vld [vmem:[%s5098_s9 + $0x288] sm:$0xff]  ;;  %v5681_v19 = vld [vmem:[%s5098_s9 + $0x3f8] sm:$0xff] }
 0x101   : > { %2454 = vmatpush.bf16.msra.mxu1 %v5609_v12  ;;  %v5642_v12 = vld [vmem:[%s5098_s9 + $0x208] sm:$0xff]  ;;  %6418 = vst [vmem:[#allocation62_spill] sm:$0xff] %v5650_v18 }
 0x102   : > { %2515 = vmatpush.bf16.msra.mxu2 %v5614_v22  ;;  %6416 = vst [vmem:[#allocation60_spill] sm:$0xff] %v5642_v12 }
 0x103   : > { %2576 = vmatpush.bf16.msra.mxu3 %v5617_v23  ;;  %v5653_v23 = vld [vmem:[%s5098_s9 + $0x2c8] sm:$0xff]  ;;  %6427 = vst [vmem:[#allocation71_spill] sm:$0xff] %v5681_v19 }
 0x104   : > { %2394 = vmatpush.bf16.msra.mxu0 %v5626_v32  ;;  %6419 = vst [vmem:[#allocation63_spill] sm:$0xff] %v5653_v23  ;;  %v1302_v32 = vpop.f32.mrf.mxu2  ;;  %v1363_v22 = vpop.f32.mrf.mxu3 }
 0x105   : > { %2455 = vmatpush.bf16.msra.mxu1 %v5629_v33  ;;  %v5658_v33 = vld [vmem:[%s5098_s9 + $0x200] sm:$0xff]  ;;  %v5672_v22 = vld [vmem:[%s5098_s9 + $0x338] sm:$0xff] }
 0x106   : > { %2516 = vmatpush.bf16.msra.mxu2 %v5634_v7  ;;  %6420 = vst [vmem:[#allocation64_spill] sm:$0xff] %v5658_v33  ;;  %v5661_v7 = vld [vmem:[%s5098_s9 + $0x240] sm:$0xff] }
 0x107   : > { %2577 = vmatpush.bf16.msra.mxu3 %v5637_v6  ;;  %6421 = vst [vmem:[#allocation65_spill] sm:$0xff] %v5661_v7  ;;  %v5666_v6 = vld [vmem:[%s5098_s9 + $0x280] sm:$0xff] }
 0x108   : > { %2395 = vmatpush.bf16.msra.mxu0 %v5642_v12  ;;  %6422 = vst [vmem:[#allocation66_spill] sm:$0xff] %v5666_v6  ;;  %v5669_v32 = vld [vmem:[%s5098_s9 + $0x2c0] sm:$0xff]  ;;  %v5678_v12 = vld [vmem:[%s5098_s9 + $0x3b8] sm:$0xff] }
 0x109   : > { %2456 = vmatpush.bf16.msra.mxu1 %v5645_v8  ;;  %6423 = vst [vmem:[#allocation67_spill] sm:$0xff] %v5669_v32  ;;  %v5675_v8 = vld [vmem:[%s5098_s9 + $0x378] sm:$0xff] }
 0x10a   : > { %2517 = vmatpush.bf16.msra.mxu2 %v5650_v18  ;;  %6424 = vst [vmem:[#allocation68_spill] sm:$0xff] %v5672_v22  ;;  %v5691_v18 = vld [vmem:[%s5365_s18 + $0x24] sm:$0xf] }
 0x10b   : > { %2578 = vmatpush.bf16.msra.mxu3 %v5653_v23  ;;  %6425 = vst [vmem:[#allocation69_spill] sm:$0xff] %v5675_v8  ;;  %v5688_v23 = vld [vmem:[%s5365_s18 + $0x20] sm:$0xf] }
 0x10c   : > { %6426 = vst [vmem:[#allocation70_spill] sm:$0xff] %v5678_v12  ;;  %2396 = vmatpush.bf16.msra.mxu0 %v5658_v33  ;;  %v5702_v33 = vld [vmem:[%s5098_s9 + $0x330] sm:$0xff]  ;;  %v5743_v1 = vpop.f32.mrf.mxu0 }
 0x10d   : > { %2457 = vmatpush.bf16.msra.mxu1 %v5661_v7  ;;  %6428 = vst [vmem:[#allocation72_spill] sm:$0xff] %v5702_v33  ;;  %v5713_v7 = vld [vmem:[%s5098_s9 + $0x3f0] sm:$0xff] }
 0x10e   : > { %2518 = vmatpush.bf16.msra.mxu2 %v5666_v6  ;;  %v5705_v6 = vld [vmem:[%s5098_s9 + $0x370] sm:$0xff]  ;;  %6431 = vst [vmem:[#allocation75_spill] sm:$0xff] %v5713_v7 }
 0x10f   : > { %2579 = vmatpush.bf16.msra.mxu3 %v5669_v32  ;;  %6429 = vst [vmem:[#allocation73_spill] sm:$0xff] %v5705_v6  ;;  %v5710_v32 = vld [vmem:[%s5098_s9 + $0x3b0] sm:$0xff]  ;;  %2397 = vmatmul.bf16.vlgmr.msra.gmra.mxu0 %v5688_v23 }
 0x110   : > { %2633 = vmatpush.bf16.msrb.mxu0 %v5672_v22  ;;  %6430 = vst [vmem:[#allocation74_spill] sm:$0xff] %v5710_v32  ;;  %2458 = vmatmul.bf16.vlgmr.msra.gmra.mxu1 %v5691_v18  ;;  %v5733_v22 = vld [vmem:[%s5098_s9 + $0x3e8] sm:$0xff] }
 0x111   : > { %2694 = vmatpush.bf16.msrb.mxu1 %v5675_v8  ;;  %2519 = vmatmul.bf16.vlgmr.msra.gmra.mxu2 %v5694_v5  ;;  %v5730_v8 = vld [vmem:[%s5098_s9 + $0x3a8] sm:$0xff]  ;;  %6435 = vst [vmem:[#allocation79_spill] sm:$0xff] %v5733_v22 }
 0x112   : > { %2755 = vmatpush.bf16.msrb.mxu2 %v5678_v12  ;;  %2580 = vmatmul.bf16.vlgmr.msra.gmra.mxu3 %v5699_v4  ;;  %v5725_v12 = vld [vmem:[%s5098_s9 + $0x368] sm:$0xff]  ;;  %6434 = vst [vmem:[#allocation78_spill] sm:$0xff] %v5730_v8 }
 0x113   : > { %2816 = vmatpush.bf16.msrb.mxu3 %v5681_v19  ;;  %v5722_v19 = vld [vmem:[%s5098_s9 + $0x328] sm:$0xff]  ;;  %6433 = vst [vmem:[#allocation77_spill] sm:$0xff] %v5725_v12 }
 0x114   : > { %2634 = vmatpush.bf16.msrb.mxu0 %v5702_v33  ;;  %6432 = vst [vmem:[#allocation76_spill] sm:$0xff] %v5722_v19  ;;  %v5741_v33 = vld [vmem:[%s5098_s9 + $0x360] sm:$0xff]  ;;  %v5771_v63 = vpop.f32.mrf.mxu2 }
 0x115   : > { %2695 = vmatpush.bf16.msrb.mxu1 %v5705_v6  ;;  %v5738_v6 = vld [vmem:[%s5098_s9 + $0x320] sm:$0xff]  ;;  %6437 = vst [vmem:[#allocation81_spill] sm:$0xff] %v5741_v33 }
 0x116   : > { %2756 = vmatpush.bf16.msrb.mxu2 %v5710_v32  ;;  %6436 = vst [vmem:[#allocation80_spill] sm:$0xff] %v5738_v6  ;;  %v5745_v32 = vpop.f32.mrf.mxu1 }
 0x117   : > { %2817 = vmatpush.bf16.msrb.mxu3 %v5713_v7  ;;  %v5750_v7 = vld [vmem:[%s5098_s9 + $0x3a0] sm:$0xff] }
 0x118   : > { %2635 = vmatpush.bf16.msrb.mxu0 %v5722_v19  ;;  %6438 = vst [vmem:[#allocation82_spill] sm:$0xff] %v5750_v7  ;;  %v5753_v19 = vld [vmem:[%s5098_s9 + $0x3e0] sm:$0xff] }
 0x119   : > { %2696 = vmatpush.bf16.msrb.mxu1 %v5725_v12  ;;  %6439 = vst [vmem:[#allocation83_spill] sm:$0xff] %v5753_v19  ;;  %v5758_v12 = vld [vmem:[%s5098_s9 + $0x318] sm:$0xff] }
 0x11a   : > { %2757 = vmatpush.bf16.msrb.mxu2 %v5730_v8  ;;  %6440 = vst [vmem:[#allocation84_spill] sm:$0xff] %v5758_v12  ;;  %v5769_v8 = vld [vmem:[%s5098_s9 + $0x3d8] sm:$0xff] }
 0x11b   : > { %2818 = vmatpush.bf16.msrb.mxu3 %v5733_v22  ;;  %v5766_v22 = vld [vmem:[%s5098_s9 + $0x398] sm:$0xff]  ;;  %6443 = vst [vmem:[#allocation87_spill] sm:$0xff] %v5769_v8 }
 0x11c   : > { %2636 = vmatpush.bf16.msrb.mxu0 %v5738_v6  ;;  %6442 = vst [vmem:[#allocation86_spill] sm:$0xff] %v5766_v22  ;;  %v5773_v6 = vpop.f32.mrf.mxu3 }
 0x11d   : > { %2697 = vmatpush.bf16.msrb.mxu1 %v5741_v33  ;;  %v5778_v33 = vld [vmem:[%s5098_s9 + $0x310] sm:$0xff] }
 0x11e   : > { %2758 = vmatpush.bf16.msrb.mxu2 %v5750_v7  ;;  %6444 = vst [vmem:[#allocation88_spill] sm:$0xff] %v5778_v33  ;;  %v5781_v7 = vld [vmem:[%s5098_s9 + $0x350] sm:$0xff]  ;;  %v1485_v62 = vpop.f32.mrf.mxu1 }
 0x11f   : > { %2819 = vmatpush.bf16.msrb.mxu3 %v5753_v19  ;;  %6445 = vst [vmem:[#allocation89_spill] sm:$0xff] %v5781_v7  ;;  %v1424_v19 = vpop.f32.mrf.mxu0  ;;  %v5802_v62 = vld [vmem:[%s5098_s9 + $0x388] sm:$0xff] }
 0x120   : > { %2637 = vmatpush.bf16.msrb.mxu0 %v5758_v12  ;;  %v5797_v19 = vld [vmem:[%s5098_s9 + $0x348] sm:$0xff]  ;;  %6450 = vst [vmem:[#allocation94_spill] sm:$0xff] %v5802_v62 }
 0x121   : > { %2698 = vmatpush.bf16.msrb.mxu1 %v5761_v0  ;;  %v5794_v0 = vld [vmem:[%s5098_s9 + $0x308] sm:$0xff]  ;;  %6449 = vst [vmem:[#allocation93_spill] sm:$0xff] %v5797_v19 }
 0x122   : > { %2759 = vmatpush.bf16.msrb.mxu2 %v5766_v22  ;;  %6448 = vst [vmem:[#allocation92_spill] sm:$0xff] %v5794_v0  ;;  %v1546_v22 = vpop.f32.mrf.mxu2 }
 0x123   : > { %2820 = vmatpush.bf16.msrb.mxu3 %v5769_v8  ;;  %v5805_v8 = vld [vmem:[%s5098_s9 + $0x3c8] sm:$0xff]  ;;  %v5828_v22 = vld [vmem:[%s5365_s18 + $0x30] sm:$0xf] }
 0x124   : > { %2638 = vmatpush.bf16.msrb.mxu0 %v5778_v33  ;;  %6451 = vst [vmem:[#allocation95_spill] sm:$0xff] %v5805_v8  ;;  %v1607_v33 = vpop.f32.mrf.mxu3 }
 0x125   : > { %2699 = vmatpush.bf16.msrb.mxu1 %v5781_v7  ;;  %v5810_v7 = vld [vmem:[%s5098_s9 + $0x300] sm:$0xff] }
 0x126   : > { %2760 = vmatpush.bf16.msrb.mxu2 %v5786_v61  ;;  %6452 = vst [vmem:[#allocation96_spill] sm:$0xff] %v5810_v7  ;;  %v5813_v61 = vld [vmem:[%s5098_s9 + $0x340] sm:$0xff] }
 0x127   : > { %2821 = vmatpush.bf16.msrb.mxu3 %v5789_v60  ;;  %6453 = vst [vmem:[#allocation97_spill] sm:$0xff] %v5813_v61  ;;  %v5818_v60 = vld [vmem:[%s5098_s9 + $0x380] sm:$0xff] }
 0x128   : > { %2639 = vmatpush.bf16.msrb.mxu0 %v5794_v0  ;;  %6454 = vst [vmem:[#allocation98_spill] sm:$0xff] %v5818_v60  ;;  %v5821_v33 = vld [vmem:[%s5098_s9 + $0x3c0] sm:$0xff]  ;;  %v5836_v0 = vld [vmem:[%s5365_s18 + $0x38] sm:$0xf] }
 0x129   : > { %2700 = vmatpush.bf16.msrb.mxu1 %v5797_v19  ;;  %6455 = vst [vmem:[#allocation99_spill] sm:$0xff] %v5821_v33  ;;  %v4777_v19 = vld [vmem:[%s5112_s14 + $0x38] sm:$0xff] }
 0x12a   : > { %2761 = vmatpush.bf16.msrb.mxu2 %v5802_v62  ;;  %v5831_v62 = vld [vmem:[%s5365_s18 + $0x34] sm:$0xf] }
 0x12b   : > { %2822 = vmatpush.bf16.msrb.mxu3 %v5805_v8  ;;  %v4778_v8 = vld [vmem:[%s5112_s14 + $0x78] sm:$0xff] }
 0x12c   : > { %2640 = vmatpush.bf16.msrb.mxu0 %v5810_v7  ;;  %v5839_v7 = vld [vmem:[%s5365_s18 + $0x3c] sm:$0xf] }
 0x12d   : > { %2701 = vmatpush.bf16.msrb.mxu1 %v5813_v61  ;;  %v4779_v61 = vld [vmem:[%s5112_s14 + $0xb8] sm:$0xff]  ;;  %v5853_v12 = vpop.f32.mrf.mxu1 }
 0x12e   : > { %2762 = vmatpush.bf16.msrb.mxu2 %v5818_v60  ;;  %v4780_v60 = vld [vmem:[%s5112_s14 + $0xf8] sm:$0xff] }
 0x12f   : > { %2823 = vmatpush.bf16.msrb.mxu3 %v5821_v33  ;;  %2641 = vmatmul.bf16.vlgmr.msrb.gmra.mxu0 %v5828_v22  ;;  %v5851_v33 = vpop.f32.mrf.mxu0 }
 0x130   : > { %2829 = vmatpush.bf16.msra.mxu0 %v4777_v19  ;;  %2702 = vmatmul.bf16.vlgmr.msrb.gmra.mxu1 %v5831_v62  ;;  %v4782_v19 = vld [vmem:[%s5112_s14 + $0x70] sm:$0xff] }
 0x131   : > { %2842 = vmatpush.bf16.msra.mxu1 %v4778_v8  ;;  %2763 = vmatmul.bf16.vlgmr.msrb.gmra.mxu2 %v5836_v0  ;;  %v4781_v8 = vld [vmem:[%s5112_s14 + $0x30] sm:$0xff] }
 0x132   : > { %2855 = vmatpush.bf16.msra.mxu2 %v4779_v61  ;;  %2824 = vmatmul.bf16.vlgmr.msrb.gmra.mxu3 %v5839_v7  ;;  %v4783_v61 = vld [vmem:[%s5112_s14 + $0xb0] sm:$0xff] }
 0x133   : > { %2868 = vmatpush.bf16.msra.mxu3 %v4780_v60  ;;  %v4784_v60 = vld [vmem:[%s5112_s14 + $0xf0] sm:$0xff] }
 0x134   : > { %2830 = vmatpush.bf16.msra.mxu0 %v4781_v8  ;;  %v4788_v8 = vld [vmem:[%s5112_s14 + $0xe8] sm:$0xff] }
 0x135   : > { %2843 = vmatpush.bf16.msra.mxu1 %v4782_v19  ;;  %v4789_v19 = vld [vmem:[%s5112_s14 + $0x20] sm:$0xff] }
 0x136   : > { %2856 = vmatpush.bf16.msra.mxu2 %v4783_v61  ;;  %v4790_v61 = vld [vmem:[%s5112_s14 + $0x60] sm:$0xff] }
 0x137   : > { %2869 = vmatpush.bf16.msra.mxu3 %v4784_v60  ;;  %v4791_v60 = vld [vmem:[%s5112_s14 + $0xa0] sm:$0xff] }
 0x138   : > { %2831 = vmatpush.bf16.msra.mxu0 %v4785_v59  ;;  %v5863_v59 = vpop.f32.mrf.mxu2 }
 0x139   : > { %2844 = vmatpush.bf16.msra.mxu1 %v4786_v58  ;;  %v5865_v58 = vpop.f32.mrf.mxu3 }
 0x13a   : > { %2857 = vmatpush.bf16.msra.mxu2 %v4787_v57  ;;  %v1668_v57 = vpop.f32.mrf.mxu0 }
 0x13b   : > { %2870 = vmatpush.bf16.msra.mxu3 %v4788_v8  ;;  %v1729_v8 = vpop.f32.mrf.mxu1  ;;  %v4799_v57 = vld [vmem:[%s5112_s14 + $0x90] sm:$0xff] }
 0x13c   : > { %2832 = vmatpush.bf16.msra.mxu0 %v4789_v19  ;;  %v4794_v19 = vld [vmem:[%s5112_s14 + $0x58] sm:$0xff]  ;;  %v4800_v8 = vld [vmem:[%s5112_s14 + $0xd0] sm:$0xff] }
 0x13d   : > { %2845 = vmatpush.bf16.msra.mxu1 %v4790_v61  ;;  %v4795_v61 = vld [vmem:[%s5112_s14 + $0x98] sm:$0xff] }
 0x13e   : > { %2858 = vmatpush.bf16.msra.mxu2 %v4791_v60  ;;  %v4796_v60 = vld [vmem:[%s5112_s14 + $0xd8] sm:$0xff] }
 0x13f   : > { %2871 = vmatpush.bf16.msra.mxu3 %v4792_v56  ;;  %v4797_v56 = vld [vmem:[%s5112_s14 + $0x10] sm:$0xff] }
 0x140   : > { %2833 = vmatpush.bf16.msra.mxu0 %v4793_v51  ;;  %v1790_v51 = vpop.f32.mrf.mxu2 }
 0x141   : > { %2846 = vmatpush.bf16.msra.mxu1 %v4794_v19  ;;  %v1851_v19 = vpop.f32.mrf.mxu3  ;;  %v4808_v51 = vld [vmem:[%s5112_s14 + $0xc0] sm:$0xff] }
 0x142   : > { %2859 = vmatpush.bf16.msra.mxu2 %v4795_v61  ;;  %v4802_v61 = vld [vmem:[%s5112_s14 + $0x48] sm:$0xff]  ;;  %v4810_v19 = vld [vmem:[%s5112_s14 + $0x178] sm:$0xff] }
 0x143   : > { %2872 = vmatpush.bf16.msra.mxu3 %v4796_v60  ;;  %v4803_v60 = vld [vmem:[%s5112_s14 + $0x88] sm:$0xff] }
 0x144   : > { %2834 = vmatpush.bf16.msra.mxu0 %v4797_v56  ;;  %v4804_v56 = vld [vmem:[%s5112_s14 + $0xc8] sm:$0xff] }
 0x145   : > { %2847 = vmatpush.bf16.msra.mxu1 %v4798_v50  ;;  %v4805_v50 = vld [vmem:[%s5112_s14] sm:$0xff] }
 0x146   : > { %2860 = vmatpush.bf16.msra.mxu2 %v4799_v57  ;;  %v4806_v57 = vld [vmem:[%s5112_s14 + $0x40] sm:$0xff] }
 0x147   : > { %2873 = vmatpush.bf16.msra.mxu3 %v4800_v8  ;;  %v4807_v8 = vld [vmem:[%s5112_s14 + $0x80] sm:$0xff] }
 0x148   : > { %2835 = vmatpush.bf16.msra.mxu0 %v4801_v49  ;;  %v4809_v49 = vld [vmem:[%s5112_s14 + $0x138] sm:$0xff] }
 0x149   : > { %2848 = vmatpush.bf16.msra.mxu1 %v4802_v61  ;;  %v4811_v61 = vld [vmem:[%s5112_s14 + $0x1b8] sm:$0xff] }
 0x14a   : > { %2861 = vmatpush.bf16.msra.mxu2 %v4803_v60  ;;  %v4812_v60 = vld [vmem:[%s5112_s14 + $0x1f8] sm:$0xff] }
 0x14b   : > { %2874 = vmatpush.bf16.msra.mxu3 %v4804_v56  ;;  %v4813_v56 = vld [vmem:[%s5112_s14 + $0x130] sm:$0xff] }
 0x14c   : > { %2836 = vmatpush.bf16.msra.mxu0 %v4805_v50  ;;  %v4814_v50 = vld [vmem:[%s5112_s14 + $0x170] sm:$0xff] }
 0x14d   : > { %2849 = vmatpush.bf16.msra.mxu1 %v4806_v57  ;;  %v4815_v57 = vld [vmem:[%s5112_s14 + $0x1b0] sm:$0xff] }
 0x14e   : > { %2862 = vmatpush.bf16.msra.mxu2 %v4807_v8  ;;  %v4816_v8 = vld [vmem:[%s5112_s14 + $0x1f0] sm:$0xff] }
 0x14f   : > { %2875 = vmatpush.bf16.msra.mxu3 %v4808_v51  ;;  %2837 = vmatmul.bf16.vlgmr.msra.gmra.mxu0 %v5384_v52  ;;  %v1910_v52 = vpop.f32.mrf.mxu0 }
 0x150   : > { %2881 = vmatpush.bf16.msrb.mxu0 %v4809_v49  ;;  %2850 = vmatmul.bf16.vlgmr.msra.gmra.mxu1 %v5387_v53  ;;  %v1971_v53 = vpop.f32.mrf.mxu1  ;;  %v3037_v51 = vsub.f32 %v5439_v2, %v1910_v52 }
 0x151   : > { %2894 = vmatpush.bf16.msrb.mxu1 %v4810_v19  ;;  %2863 = vmatmul.bf16.vlgmr.msra.gmra.mxu2 %v5390_v54  ;;  %v4817_v54 = vld [vmem:[%s5112_s14 + $0x128] sm:$0xff]  ;;  %v3038_v49 = vsub.f32 %v5441_v3, %v1971_v53 }
 0x152   : > { %2907 = vmatpush.bf16.msrb.mxu2 %v4811_v61  ;;  %2876 = vmatmul.bf16.vlgmr.msra.gmra.mxu3 %v5395_v55  ;;  %v4818_v55 = vld [vmem:[%s5112_s14 + $0x168] sm:$0xff]  ;;  %3053 = vst [vmem:[%s5901_s29] sm:$0xff] %v3037_v51  ;;  %v4826_v51 = vld [vmem:[%s5112_s14 + $0x158] sm:$0xff] }
 0x153   : > { %2920 = vmatpush.bf16.msrb.mxu3 %v4812_v60  ;;  %v4819_v19 = vld [vmem:[%s5112_s14 + $0x1a8] sm:$0xff]  ;;  %3054 = vst [vmem:[%s5901_s29 + $0x8] sm:$0xff] %v3038_v49  ;;  %v4821_v60 = vld [vmem:[%s5112_s14 + $0x120] sm:$0xff]  ;;  %v4827_v49 = vld [vmem:[%s5112_s14 + $0x198] sm:$0xff] }
 0x154   : > { %2882 = vmatpush.bf16.msrb.mxu0 %v4813_v56  ;;  %v4820_v61 = vld [vmem:[%s5112_s14 + $0x1e8] sm:$0xff]  ;;  %v4822_v56 = vld [vmem:[%s5112_s14 + $0x160] sm:$0xff]  ;;  %v2032_v2 = vpop.f32.mrf.mxu2 }
 0x155   : > { %2895 = vmatpush.bf16.msrb.mxu1 %v4814_v50  ;;  %v4823_v50 = vld [vmem:[%s5112_s14 + $0x1a0] sm:$0xff]  ;;  %v2093_v3 = vpop.f32.mrf.mxu3 }
 0x156   : > { %2908 = vmatpush.bf16.msrb.mxu2 %v4815_v57  ;;  %v4824_v57 = vld [vmem:[%s5112_s14 + $0x1e0] sm:$0xff]  ;;  %v3040_v52 = vsub.f32 %v5469_v11, %v2093_v3  ;;  %v4830_v11 = vld [vmem:[%s5112_s14 + $0x150] sm:$0xff]  ;;  %v4835_v3 = vld [vmem:[%s5112_s14 + $0x188] sm:$0xff] }
 0x157   : > { %2921 = vmatpush.bf16.msrb.mxu3 %v4816_v8  ;;  %v3039_v8 = vsub.f32 %v5467_v10, %v2032_v2  ;;  %v1912_v53 = vpop.f32.mrf.mxu0  ;;  %v4829_v10 = vld [vmem:[%s5112_s14 + $0x110] sm:$0xff]  ;;  %v4834_v2 = vld [vmem:[%s5112_s14 + $0x148] sm:$0xff] }
 0x158   : > { %2883 = vmatpush.bf16.msrb.mxu0 %v4817_v54  ;;  %v1973_v54 = vpop.f32.mrf.mxu1  ;;  %3056 = vst [vmem:[%s5901_s29 + $0x18] sm:$0xff] %v3040_v52  ;;  %v4837_v52 = vld [vmem:[%s5112_s14 + $0x100] sm:$0xff] }
 0x159   : > { %2896 = vmatpush.bf16.msrb.mxu1 %v4818_v55  ;;  %v4825_v55 = vld [vmem:[%s5112_s14 + $0x118] sm:$0xff]  ;;  %3055 = vst [vmem:[%s5901_s29 + $0x10] sm:$0xff] %v3039_v8  ;;  %v4836_v8 = vld [vmem:[%s5112_s14 + $0x1c8] sm:$0xff]  ;;  %v4838_v53 = vld [vmem:[%s5112_s14 + $0x140] sm:$0xff] }
 0x15a   : > { %2909 = vmatpush.bf16.msrb.mxu2 %v4819_v19  ;;  %v4828_v19 = vld [vmem:[%s5112_s14 + $0x1d8] sm:$0xff]  ;;  %v4839_v54 = vld [vmem:[%s5112_s14 + $0x180] sm:$0xff] }
 0x15b   : > { %2922 = vmatpush.bf16.msrb.mxu3 %v4820_v61  ;;  %v4831_v61 = vld [vmem:[%s5112_s14 + $0x190] sm:$0xff] }
 0x15c   : > { %2884 = vmatpush.bf16.msrb.mxu0 %v4821_v60  ;;  %v4832_v60 = vld [vmem:[%s5112_s14 + $0x1d0] sm:$0xff] }
 0x15d   : > { %2897 = vmatpush.bf16.msrb.mxu1 %v4822_v56  ;;  %v2034_v56 = vpop.f32.mrf.mxu2 }
 0x15e   : > { %2910 = vmatpush.bf16.msrb.mxu2 %v4823_v50  ;;  %v2095_v50 = vpop.f32.mrf.mxu3  ;;  %v4848_v56 = vld [vmem:[%s5112_s14 + $0x2f0] sm:$0xff] }
 0x15f   : > { %2923 = vmatpush.bf16.msrb.mxu3 %v4824_v57  ;;  %v4833_v57 = vld [vmem:[%s5112_s14 + $0x108] sm:$0xff] }
 0x160   : > { %2885 = vmatpush.bf16.msrb.mxu0 %v4825_v55  ;;  %v4840_v55 = vld [vmem:[%s5112_s14 + $0x1c0] sm:$0xff]  ;;  %v4849_v50 = vld [vmem:[%s5112_s14 + $0x228] sm:$0xff] }
 0x161   : > { %2898 = vmatpush.bf16.msrb.mxu1 %v4826_v51  ;;  %v4841_v51 = vld [vmem:[%s5112_s14 + $0x238] sm:$0xff] }
 0x162   : > { %2911 = vmatpush.bf16.msrb.mxu2 %v4827_v49  ;;  %v4842_v49 = vld [vmem:[%s5112_s14 + $0x278] sm:$0xff] }
 0x163   : > { %2924 = vmatpush.bf16.msrb.mxu3 %v4828_v19  ;;  %v4843_v19 = vld [vmem:[%s5112_s14 + $0x2b8] sm:$0xff] }
 0x164   : > { %2886 = vmatpush.bf16.msrb.mxu0 %v4829_v10  ;;  %v4844_v10 = vld [vmem:[%s5112_s14 + $0x2f8] sm:$0xff] }
 0x165   : > { %2899 = vmatpush.bf16.msrb.mxu1 %v4830_v11  ;;  %v4845_v11 = vld [vmem:[%s5112_s14 + $0x230] sm:$0xff] }
 0x166   : > { %2912 = vmatpush.bf16.msrb.mxu2 %v4831_v61  ;;  %v4846_v61 = vld [vmem:[%s5112_s14 + $0x270] sm:$0xff] }
 0x167   : > { %2925 = vmatpush.bf16.msrb.mxu3 %v4832_v60  ;;  %v4847_v60 = vld [vmem:[%s5112_s14 + $0x2b0] sm:$0xff] }
 0x168   : > { %2887 = vmatpush.bf16.msrb.mxu0 %v4833_v57 }
 0x169   : > { %2900 = vmatpush.bf16.msrb.mxu1 %v4834_v2  ;;  %v4851_v2 = vld [vmem:[%s5112_s14 + $0x2a8] sm:$0xff] }
 0x16a   : > { %2913 = vmatpush.bf16.msrb.mxu2 %v4835_v3  ;;  %v4852_v3 = vld [vmem:[%s5112_s14 + $0x2e8] sm:$0xff] }
 0x16b   : > { %2926 = vmatpush.bf16.msrb.mxu3 %v4836_v8  ;;  %v4853_v8 = vld [vmem:[%s5112_s14 + $0x220] sm:$0xff] }
 0x16c   : > { %2888 = vmatpush.bf16.msrb.mxu0 %v4837_v52  ;;  %v4854_v52 = vld [vmem:[%s5112_s14 + $0x260] sm:$0xff] }
 0x16d   : > { %2901 = vmatpush.bf16.msrb.mxu1 %v4838_v53  ;;  %v4855_v53 = vld [vmem:[%s5112_s14 + $0x2a0] sm:$0xff] }
 0x16e   : > { %2914 = vmatpush.bf16.msrb.mxu2 %v4839_v54  ;;  %v4856_v54 = vld [vmem:[%s5112_s14 + $0x2e0] sm:$0xff] }
 0x16f   : > { %2927 = vmatpush.bf16.msrb.mxu3 %v4840_v55  ;;  %2889 = vmatmul.bf16.vlgmr.msrb.gmra.mxu0 %v5536_v21 }
 0x170   : > { %2933 = vmatpush.bf16.msra.mxu0 %v4841_v51  ;;  %2902 = vmatmul.bf16.vlgmr.msrb.gmra.mxu1 %v5539_v20  ;;  %v4850_v20 = vld [vmem:[%s5112_s14 + $0x268] sm:$0xff] }
 0x171   : > { %2946 = vmatpush.bf16.msra.mxu1 %v4842_v49  ;;  %2915 = vmatmul.bf16.vlgmr.msrb.gmra.mxu2 %v5542_v17  ;;  %v2154_v17 = vpop.f32.mrf.mxu0 }
 0x172   : > { %2959 = vmatpush.bf16.msra.mxu2 %v4843_v19  ;;  %2928 = vmatmul.bf16.vlgmr.msrb.gmra.mxu3 %v5547_v16  ;;  %v2215_v16 = vpop.f32.mrf.mxu1  ;;  %v3041_v21 = vsub.f32 %v5591_v13, %v2154_v17  ;;  %v4864_v17 = vld [vmem:[%s5112_s14 + $0x2d0] sm:$0xff] }
 0x173   : > { %2972 = vmatpush.bf16.msra.mxu3 %v4844_v10  ;;  %v3042_v57 = vsub.f32 %v5593_v15, %v2215_v16  ;;  %v4857_v10 = vld [vmem:[%s5112_s14 + $0x218] sm:$0xff] }
 0x174   : > { %2934 = vmatpush.bf16.msra.mxu0 %v4845_v11  ;;  %3057 = vst [vmem:[%s5901_s29 + $0x20] sm:$0xff] %v3041_v21  ;;  %v2276_v13 = vpop.f32.mrf.mxu2  ;;  %v4858_v11 = vld [vmem:[%s5112_s14 + $0x258] sm:$0xff]  ;;  %v4866_v21 = vld [vmem:[%s5112_s14 + $0x248] sm:$0xff] }
 0x175   : > { %2947 = vmatpush.bf16.msra.mxu1 %v4846_v61  ;;  %3058 = vst [vmem:[%s5901_s29 + $0x28] sm:$0xff] %v3042_v57  ;;  %v2337_v15 = vpop.f32.mrf.mxu3  ;;  %v3043_v55 = vsub.f32 %v5619_v9, %v2276_v13  ;;  %v4859_v61 = vld [vmem:[%s5112_s14 + $0x298] sm:$0xff]  ;;  %v4861_v9 = vld [vmem:[%s5112_s14 + $0x210] sm:$0xff]  ;;  %v4867_v57 = vld [vmem:[%s5112_s14 + $0x288] sm:$0xff] }
 0x176   : > { %2960 = vmatpush.bf16.msra.mxu2 %v4847_v60  ;;  %v3044_v51 = vsub.f32 %v5621_v14, %v2337_v15  ;;  %v4860_v60 = vld [vmem:[%s5112_s14 + $0x2d8] sm:$0xff]  ;;  %v4862_v14 = vld [vmem:[%s5112_s14 + $0x250] sm:$0xff] }
 0x177   : > { %2973 = vmatpush.bf16.msra.mxu3 %v4848_v56  ;;  %3059 = vst [vmem:[%s5901_s29 + $0x30] sm:$0xff] %v3043_v55  ;;  %v4863_v56 = vld [vmem:[%s5112_s14 + $0x290] sm:$0xff]  ;;  %v4874_v13 = vld [vmem:[%s5112_s14 + $0x378] sm:$0xff] }
 0x178   : > { %2935 = vmatpush.bf16.msra.mxu0 %v4849_v50  ;;  %3060 = vst [vmem:[%s5901_s29 + $0x38] sm:$0xff] %v3044_v51  ;;  %v4875_v15 = vld [vmem:[%s5112_s14 + $0x3b8] sm:$0xff]  ;;  %v4877_v51 = vld [vmem:[%s5112_s14 + $0x330] sm:$0xff] }
 0x179   : > { %2948 = vmatpush.bf16.msra.mxu1 %v4850_v20  ;;  %v2156_v49 = vpop.f32.mrf.mxu0  ;;  %v4865_v20 = vld [vmem:[%s5112_s14 + $0x208] sm:$0xff]  ;;  %v4876_v55 = vld [vmem:[%s5112_s14 + $0x3f8] sm:$0xff] }
 0x17a   : > { %2961 = vmatpush.bf16.msra.mxu2 %v4851_v2  ;;  %v2217_v19 = vpop.f32.mrf.mxu1  ;;  %v4868_v2 = vld [vmem:[%s5112_s14 + $0x2c8] sm:$0xff]  ;;  %v4878_v49 = vld [vmem:[%s5112_s14 + $0x370] sm:$0xff] }
 0x17b   : > { %2974 = vmatpush.bf16.msra.mxu3 %v4852_v3  ;;  %v4869_v3 = vld [vmem:[%s5112_s14 + $0x200] sm:$0xff]  ;;  %v4879_v19 = vld [vmem:[%s5112_s14 + $0x3b0] sm:$0xff] }
 0x17c   : > { %2936 = vmatpush.bf16.msra.mxu0 %v4853_v8  ;;  %v2278_v16 = vpop.f32.mrf.mxu2  ;;  %v4870_v8 = vld [vmem:[%s5112_s14 + $0x240] sm:$0xff] }
 0x17d   : > { %2949 = vmatpush.bf16.msra.mxu1 %v4854_v52  ;;  %v2339_v50 = vpop.f32.mrf.mxu3  ;;  %v4871_v52 = vld [vmem:[%s5112_s14 + $0x280] sm:$0xff] }
 0x17e   : > { %2962 = vmatpush.bf16.msra.mxu2 %v4855_v53  ;;  %v4872_v53 = vld [vmem:[%s5112_s14 + $0x2c0] sm:$0xff] }
 0x17f   : > { %2975 = vmatpush.bf16.msra.mxu3 %v4856_v54  ;;  %v4873_v54 = vld [vmem:[%s5112_s14 + $0x338] sm:$0xff]  ;;  %v4888_v16 = vld [vmem:[%s5112_s14 + $0x3e0] sm:$0xff] }
 0x180   : > { %2937 = vmatpush.bf16.msra.mxu0 %v4857_v10  ;;  %v4880_v10 = vld [vmem:[%s5112_s14 + $0x3f0] sm:$0xff] }
 0x181   : > { %2950 = vmatpush.bf16.msra.mxu1 %v4858_v11  ;;  %v4881_v11 = vld [vmem:[%s5112_s14 + $0x328] sm:$0xff] }
 0x182   : > { %2963 = vmatpush.bf16.msra.mxu2 %v4859_v61 }
 0x183   : > { %2976 = vmatpush.bf16.msra.mxu3 %v4860_v60  ;;  %v4883_v60 = vld [vmem:[%s5112_s14 + $0x3a8] sm:$0xff] }
 0x184   : > { %2938 = vmatpush.bf16.msra.mxu0 %v4861_v9  ;;  %v4884_v9 = vld [vmem:[%s5112_s14 + $0x3e8] sm:$0xff] }
 0x185   : > { %2951 = vmatpush.bf16.msra.mxu1 %v4862_v14  ;;  %v4885_v14 = vld [vmem:[%s5112_s14 + $0x320] sm:$0xff] }
 0x186   : > { %2964 = vmatpush.bf16.msra.mxu2 %v4863_v56  ;;  %v4886_v56 = vld [vmem:[%s5112_s14 + $0x360] sm:$0xff] }
 0x187   : > { %2977 = vmatpush.bf16.msra.mxu3 %v4864_v17  ;;  %v4887_v17 = vld [vmem:[%s5112_s14 + $0x3a0] sm:$0xff] }
 0x188   : > { %2939 = vmatpush.bf16.msra.mxu0 %v4865_v20 }
 0x189   : > { %2952 = vmatpush.bf16.msra.mxu1 %v4866_v21 }
 0x18a   : > { %2965 = vmatpush.bf16.msra.mxu2 %v4867_v57 }
 0x18b   : > { %2978 = vmatpush.bf16.msra.mxu3 %v4868_v2  ;;  %v4889_v2 = vld [vmem:[%s5112_s14 + $0x318] sm:$0xff] }
 0x18c   : > { %2940 = vmatpush.bf16.msra.mxu0 %v4869_v3  ;;  %v4890_v3 = vld [vmem:[%s5112_s14 + $0x358] sm:$0xff] }
 0x18d   : > { %2953 = vmatpush.bf16.msra.mxu1 %v4870_v8  ;;  %v4891_v8 = vld [vmem:[%s5112_s14 + $0x398] sm:$0xff] }
 0x18e   : > { %2966 = vmatpush.bf16.msra.mxu2 %v4871_v52  ;;  %v4892_v52 = vld [vmem:[%s5112_s14 + $0x3d8] sm:$0xff] }
 0x18f   : > { %2979 = vmatpush.bf16.msra.mxu3 %v4872_v53  ;;  %2941 = vmatmul.bf16.vlgmr.msra.gmra.mxu0 %v5688_v23  ;;  %v4882_v23 = vld [vmem:[%s5112_s14 + $0x368] sm:$0xff]  ;;  %v4895_v53 = vld [vmem:[%s5112_s14 + $0x390] sm:$0xff] }
 0x190   : > { %2985 = vmatpush.bf16.msrb.mxu0 %v4873_v54  ;;  %2954 = vmatmul.bf16.vlgmr.msra.gmra.mxu1 %v5691_v18  ;;  %v4896_v54 = vld [vmem:[%s5112_s14 + $0x3d0] sm:$0xff] }
 0x191   : > { %2998 = vmatpush.bf16.msrb.mxu1 %v4874_v13  ;;  %2967 = vmatmul.bf16.vlgmr.msra.gmra.mxu2 %v5694_v5  ;;  %v2398_v5 = vpop.f32.mrf.mxu0 }
 0x192   : > { %3011 = vmatpush.bf16.msrb.mxu2 %v4875_v15  ;;  %2980 = vmatmul.bf16.vlgmr.msra.gmra.mxu3 %v5699_v4  ;;  %v2459_v4 = vpop.f32.mrf.mxu1  ;;  %v3045_v18 = vsub.f32 %v5743_v1, %v2398_v5  ;;  %v4902_v5 = vld [vmem:[%s5112_s14 + $0x340] sm:$0xff] }
 0x193   : > { %3024 = vmatpush.bf16.msrb.mxu3 %v4876_v55  ;;  %v3046_v61 = vsub.f32 %v5745_v32, %v2459_v4  ;;  %v4897_v55 = vld [vmem:[%s5112_s14 + $0x308] sm:$0xff]  ;;  %v4903_v4 = vld [vmem:[%s5112_s14 + $0x380] sm:$0xff] }
 0x194   : > { %2986 = vmatpush.bf16.msrb.mxu0 %v4877_v51  ;;  %3061 = vst [vmem:[%s5901_s29 + $0x40] sm:$0xff] %v3045_v18  ;;  %v2520_v1 = vpop.f32.mrf.mxu2  ;;  %v4898_v51 = vld [vmem:[%s5112_s14 + $0x348] sm:$0xff]  ;;  %v4906_v18 = vld [vmem:[%s5098_s9 + $0x78] sm:$0xff] }
 0x195   : > { %2999 = vmatpush.bf16.msrb.mxu1 %v4878_v49  ;;  %3062 = vst [vmem:[%s5901_s29 + $0x48] sm:$0xff] %v3046_v61  ;;  %v2581_v32 = vpop.f32.mrf.mxu3  ;;  %v3047_v50 = vsub.f32 %v5771_v63, %v2520_v1  ;;  %v4893_v63 = vld [vmem:[%s5112_s14 + $0x310] sm:$0xff]  ;;  %v4899_v49 = vld [vmem:[%s5112_s14 + $0x388] sm:$0xff]  ;;  %v4907_v61 = vld [vmem:[%s5098_s9 + $0xb8] sm:$0xff] }
 0x196   : > { %3012 = vmatpush.bf16.msrb.mxu2 %v4879_v19  ;;  %v3048_v20 = vsub.f32 %v5773_v6, %v2581_v32  ;;  %v4894_v6 = vld [vmem:[%s5112_s14 + $0x350] sm:$0xff]  ;;  %v4900_v19 = vld [vmem:[%s5112_s14 + $0x3c8] sm:$0xff] }
 0x197   : > { %3025 = vmatpush.bf16.msrb.mxu3 %v4880_v10  ;;  %3063 = vst [vmem:[%s5901_s29 + $0x50] sm:$0xff] %v3047_v50  ;;  %v4901_v10 = vld [vmem:[%s5112_s14 + $0x300] sm:$0xff]  ;;  %v6469_v32 = vld [vmem:[#allocation18_spill] sm:$0xff]  ;;  %v6470_v50 = vld [vmem:[#allocation19_spill] sm:$0xff] }
 0x198   : > { %2987 = vmatpush.bf16.msrb.mxu0 %v4881_v11  ;;  %3064 = vst [vmem:[%s5901_s29 + $0x58] sm:$0xff] %v3048_v20  ;;  %v4904_v11 = vld [vmem:[%s5112_s14 + $0x3c0] sm:$0xff] }
 0x199   : > { %3000 = vmatpush.bf16.msrb.mxu1 %v4882_v23  ;;  %v2400_v21 = vpop.f32.mrf.mxu0  ;;  %v4905_v23 = vld [vmem:[%s5098_s9 + $0x38] sm:$0xff] }
 0x19a   : > { %3013 = vmatpush.bf16.msrb.mxu2 %v4883_v60  ;;  %v2461_v57 = vpop.f32.mrf.mxu1  ;;  %v4908_v60 = vld [vmem:[%s5098_s9 + $0xf8] sm:$0xff] }
 0x19b   : > { %3026 = vmatpush.bf16.msrb.mxu3 %v4884_v9  ;;  %v4909_v9 = vld [vmem:[%s5098_s9 + $0x30] sm:$0xff]  ;;  %v6471_v57 = vld [vmem:[#allocation20_spill] sm:$0xff] }
 0x19c   : > { %2988 = vmatpush.bf16.msrb.mxu0 %v4885_v14  ;;  %v2522_v13 = vpop.f32.mrf.mxu2  ;;  %v4910_v14 = vld [vmem:[%s5098_s9 + $0x70] sm:$0xff] }
 0x19d   : > { %3001 = vmatpush.bf16.msrb.mxu1 %v4886_v56  ;;  %v2583_v15 = vpop.f32.mrf.mxu3  ;;  %v4911_v56 = vld [vmem:[%s5098_s9 + $0xb0] sm:$0xff] }
 0x19e   : > { %3014 = vmatpush.bf16.msrb.mxu2 %v4887_v17  ;;  %v4912_v17 = vld [vmem:[%s5098_s9 + $0xf0] sm:$0xff] }
 0x19f   : > { %3027 = vmatpush.bf16.msrb.mxu3 %v4888_v16  ;;  %v6478_v13 = vld [vmem:[#allocation27_spill] sm:$0xff] }
 0x1a0   : > { %2989 = vmatpush.bf16.msrb.mxu0 %v4889_v2  ;;  %v6472_v2 = vld [vmem:[#allocation21_spill] sm:$0xff] }
 0x1a1   : > { %3002 = vmatpush.bf16.msrb.mxu1 %v4890_v3 }
 0x1a2   : > { %3015 = vmatpush.bf16.msrb.mxu2 %v4891_v8 }
 0x1a3   : > { %3028 = vmatpush.bf16.msrb.mxu3 %v4892_v52  ;;  %v6473_v52 = vld [vmem:[#allocation22_spill] sm:$0xff] }
 0x1a4   : > { %2990 = vmatpush.bf16.msrb.mxu0 %v4893_v63  ;;  %v6474_v63 = vld [vmem:[#allocation23_spill] sm:$0xff] }
 0x1a5   : > { %3003 = vmatpush.bf16.msrb.mxu1 %v4894_v6  ;;  %v6475_v6 = vld [vmem:[#allocation24_spill] sm:$0xff] }
 0x1a6   : > { %3016 = vmatpush.bf16.msrb.mxu2 %v4895_v53  ;;  %v6476_v53 = vld [vmem:[#allocation25_spill] sm:$0xff] }
 0x1a7   : > { %3029 = vmatpush.bf16.msrb.mxu3 %v4896_v54  ;;  %v6477_v54 = vld [vmem:[#allocation26_spill] sm:$0xff] }
 0x1a8   : > { %2991 = vmatpush.bf16.msrb.mxu0 %v4897_v55 }
 0x1a9   : > { %3004 = vmatpush.bf16.msrb.mxu1 %v4898_v51  ;;  %v6479_v51 = vld [vmem:[#allocation28_spill] sm:$0xff] }
 0x1aa   : > { %3017 = vmatpush.bf16.msrb.mxu2 %v4899_v49  ;;  %v6480_v49 = vld [vmem:[#allocation29_spill] sm:$0xff] }
 0x1ab   : > { %3030 = vmatpush.bf16.msrb.mxu3 %v4900_v19  ;;  %v6481_v19 = vld [vmem:[#allocation30_spill] sm:$0xff] }
 0x1ac   : > { %2992 = vmatpush.bf16.msrb.mxu0 %v4901_v10  ;;  %v2642_v16 = vpop.f32.mrf.mxu0  ;;  %v6482_v10 = vld [vmem:[#allocation31_spill] sm:$0xff] }
 0x1ad   : > { %3005 = vmatpush.bf16.msrb.mxu1 %v4902_v5  ;;  %v2703_v1 = vpop.f32.mrf.mxu1  ;;  %v6483_v5 = vld [vmem:[#allocation32_spill] sm:$0xff] }
 0x1ae   : > { %3018 = vmatpush.bf16.msrb.mxu2 %v4903_v4  ;;  %v6484_v4 = vld [vmem:[#allocation33_spill] sm:$0xff] }
 0x1af   : > { %3031 = vmatpush.bf16.msrb.mxu3 %v4904_v11  ;;  %2993 = vmatmul.bf16.vlgmr.msrb.gmra.mxu0 %v5828_v22  ;;  %v4914_v22 = vld [vmem:[%s5098_s9 + $0x58] sm:$0xff]  ;;  %v6485_v11 = vld [vmem:[#allocation34_spill] sm:$0xff] }
 0x1b0   : > { %3069 = vmatpush.bf16.msra.mxu0 %v4905_v23  ;;  %3006 = vmatmul.bf16.vlgmr.msrb.gmra.mxu1 %v5831_v62  ;;  %v6486_v23 = vld [vmem:[#allocation35_spill] sm:$0xff] }
 0x1b1   : > { %3082 = vmatpush.bf16.msra.mxu1 %v4906_v18  ;;  %3019 = vmatmul.bf16.vlgmr.msrb.gmra.mxu2 %v5836_v0  ;;  %v3049_v0 = vsub.f32 %v5851_v33, %v2642_v16  ;;  %v4913_v33 = vld [vmem:[%s5098_s9 + $0x18] sm:$0xff] }
 0x1b2   : > { %3095 = vmatpush.bf16.msra.mxu2 %v4907_v61  ;;  %3032 = vmatmul.bf16.vlgmr.msrb.gmra.mxu3 %v5839_v7  ;;  %v3050_v7 = vsub.f32 %v5853_v12, %v2703_v1  ;;  %v6487_v18 = vld [vmem:[#allocation36_spill] sm:$0xff]  ;;  %v6488_v61 = vld [vmem:[#allocation37_spill] sm:$0xff] }
 0x1b3   : > { %3108 = vmatpush.bf16.msra.mxu3 %v4908_v60  ;;  %3065 = vst [vmem:[%s5901_s29 + $0x60] sm:$0xff] %v3049_v0  ;;  %v6489_v60 = vld [vmem:[#allocation38_spill] sm:$0xff]  ;;  %v4922_v16 = vld [vmem:[%s5154_s15 + $0x1c] sm:$0xf]  ;;  %v6492_v0 = vld [vmem:[#allocation41_spill] sm:$0xff] }
 0x1b4   : > { %3070 = vmatpush.bf16.msra.mxu0 %v4909_v9  ;;  %3066 = vst [vmem:[%s5901_s29 + $0x68] sm:$0xff] %v3050_v7  ;;  %v2644_v62 = vpop.f32.mrf.mxu0  ;;  %v6490_v9 = vld [vmem:[#allocation39_spill] sm:$0xff]  ;;  %v6491_v1 = vld [vmem:[#allocation40_spill] sm:$0xff]  ;;  %v6493_v7 = vld [vmem:[#allocation42_spill] sm:$0xff] }
 0x1b5   : > { %3083 = vmatpush.bf16.msra.mxu1 %v4910_v14  ;;  %v4919_v14 = vld [vmem:[%s5154_s15 + $0x10] sm:$0xf] }
 0x1b6   : > { %3096 = vmatpush.bf16.msra.mxu2 %v4911_v56  ;;  %v4920_v56 = vld [vmem:[%s5154_s15 + $0x14] sm:$0xf] }
 0x1b7   : > { %3109 = vmatpush.bf16.msra.mxu3 %v4912_v17  ;;  %v4921_v17 = vld [vmem:[%s5154_s15 + $0x18] sm:$0xf] }
 0x1b8   : > { %3071 = vmatpush.bf16.msra.mxu0 %v5275_v24  ;;  %v2764_v24 = vpop.f32.mrf.mxu2 }
 0x1b9   : > { %3084 = vmatpush.bf16.msra.mxu1 %v5278_v25  ;;  %v2825_v25 = vpop.f32.mrf.mxu3  ;;  %v3051_v12 = vsub.f32 %v5863_v59, %v2764_v24  ;;  %v6467_v59 = vld [vmem:[#allocation16_spill] sm:$0xff]  ;;  %v6494_v24 = vld [vmem:[#allocation43_spill] sm:$0xff] }
 0x1ba   : > { %3097 = vmatpush.bf16.msra.mxu2 %v5281_v26  ;;  %v3052_v26 = vsub.f32 %v5865_v58, %v2825_v25  ;;  %v6468_v58 = vld [vmem:[#allocation17_spill] sm:$0xff]  ;;  %v6495_v25 = vld [vmem:[#allocation44_spill] sm:$0xff] }
 0x1bb   : > { %3110 = vmatpush.bf16.msra.mxu3 %v5284_v27  ;;  %v2705_v27 = vpop.f32.mrf.mxu1  ;;  %3067 = vst [vmem:[%s5901_s29 + $0x70] sm:$0xff] %v3051_v12  ;;  %v6496_v12 = vld [vmem:[#allocation45_spill] sm:$0xff] }
 0x1bc   : > { %3072 = vmatpush.bf16.msra.mxu0 %v5289_v28  ;;  %3068 = vst [vmem:[%s5901_s29 + $0x78] sm:$0xff] %v3052_v26  ;;  %v6497_v27 = vld [vmem:[#allocation46_spill] sm:$0xff] }
 0x1bd   : > { %3085 = vmatpush.bf16.msra.mxu1 %v5292_v29 }
 0x1be   : > { %3098 = vmatpush.bf16.msra.mxu2 %v5297_v30  ;;  %v6456_v30 = vld [vmem:[#allocation5_spill] sm:$0xff] }
 0x1bf   : > { %3111 = vmatpush.bf16.msra.mxu3 %v5300_v31  ;;  %v6457_v31 = vld [vmem:[#allocation6_spill] sm:$0xff] }
 0x1c0   : > { %3073 = vmatpush.bf16.msra.mxu0 %v4913_v33  ;;  %v2766_v28 = vpop.f32.mrf.mxu2  ;;  %v6498_v33 = vld [vmem:[#allocation47_spill] sm:$0xff] }
 0x1c1   : > { %3086 = vmatpush.bf16.msra.mxu1 %v4914_v22  ;;  %v2827_v29 = vpop.f32.mrf.mxu3  ;;  %v6499_v22 = vld [vmem:[#allocation48_spill] sm:$0xff]  ;;  %v6500_v28 = vld [vmem:[#allocation49_spill] sm:$0xff] }
 0x1c2   : > { %3099 = vmatpush.bf16.msra.mxu2 %v5309_v34  ;;  %v6458_v34 = vld [vmem:[#allocation7_spill] sm:$0xff]  ;;  %v6501_v29 = vld [vmem:[#allocation50_spill] sm:$0xff] }
 0x1c3   : > { %3112 = vmatpush.bf16.msra.mxu3 %v5312_v35  ;;  %v4915_v35 = vld [vmem:[%s5154_s15] sm:$0xf] }
 0x1c4   : > { %3074 = vmatpush.bf16.msra.mxu0 %v5315_v36  ;;  %v4916_v36 = vld [vmem:[%s5154_s15 + $0x4] sm:$0xf] }
 0x1c5   : > { %3087 = vmatpush.bf16.msra.mxu1 %v5318_v37  ;;  %v4917_v37 = vld [vmem:[%s5154_s15 + $0x8] sm:$0xf] }
 0x1c6   : > { %3100 = vmatpush.bf16.msra.mxu2 %v5323_v38  ;;  %v4918_v38 = vld [vmem:[%s5154_s15 + $0xc] sm:$0xf] }
 0x1c7   : > { %3113 = vmatpush.bf16.msra.mxu3 %v5326_v39  ;;  %v6459_v39 = vld [vmem:[#allocation8_spill] sm:$0xff] }
 0x1c8   : > { %3075 = vmatpush.bf16.msra.mxu0 %v5331_v40  ;;  %v6460_v40 = vld [vmem:[#allocation9_spill] sm:$0xff] }
 0x1c9   : > { %3088 = vmatpush.bf16.msra.mxu1 %v5334_v41  ;;  %v6461_v41 = vld [vmem:[#allocation10_spill] sm:$0xff] }
 0x1ca   : > { %3101 = vmatpush.bf16.msra.mxu2 %v5339_v42  ;;  %v6462_v42 = vld [vmem:[#allocation11_spill] sm:$0xff] }
 0x1cb   : > { %3114 = vmatpush.bf16.msra.mxu3 %v5342_v43  ;;  %v6463_v43 = vld [vmem:[#allocation12_spill] sm:$0xff] }
 0x1cc   : > { %3076 = vmatpush.bf16.msra.mxu0 %v5347_v44  ;;  %v6464_v44 = vld [vmem:[#allocation13_spill] sm:$0xff] }
 0x1cd   : > { %3089 = vmatpush.bf16.msra.mxu1 %v5350_v45  ;;  %v6081_v45 = vpop.f32.mrf.mxu0 }
 0x1ce   : > { %3102 = vmatpush.bf16.msra.mxu2 %v5355_v46  ;;  %v6083_v46 = vpop.f32.mrf.mxu1 }
 0x1cf   : > { %3115 = vmatpush.bf16.msra.mxu3 %v5358_v47  ;;  %3077 = vmatmul.bf16.vlgmr.msra.gmra.mxu0 %v4915_v35  ;;  %v6465_v47 = vld [vmem:[#allocation14_spill] sm:$0xff]  ;;  %v6503_v35 = vld [vmem:[#allocation52_spill] sm:$0xff] }
 0x1d0   : > { %3121 = vmatpush.bf16.msrb.mxu0 %v5368_v48  ;;  %3090 = vmatmul.bf16.vlgmr.msra.gmra.mxu1 %v4916_v36  ;;  %v6466_v48 = vld [vmem:[#allocation15_spill] sm:$0xff]  ;;  %v6504_v36 = vld [vmem:[#allocation53_spill] sm:$0xff] }
 0x1d1   : > { %3134 = vmatpush.bf16.msrb.mxu1 %v6456_v30  ;;  %3103 = vmatmul.bf16.vlgmr.msra.gmra.mxu2 %v4917_v37  ;;  %v6502_v30 = vld [vmem:[#allocation51_spill] sm:$0xff] }
 0x1d2   : > { %3147 = vmatpush.bf16.msrb.mxu2 %v6457_v31  ;;  %3116 = vmatmul.bf16.vlgmr.msra.gmra.mxu3 %v4918_v38 }
 0x1d3   : > { %3160 = vmatpush.bf16.msrb.mxu3 %v6458_v34 }
 0x1d4   : > { %3122 = vmatpush.bf16.msrb.mxu0 %v6459_v39  ;;  %v6091_v20 = vpop.f32.mrf.mxu2  ;;  %v6505_v39 = vld [vmem:[#allocation54_spill] sm:$0xff] }
 0x1d5   : > { %3135 = vmatpush.bf16.msrb.mxu1 %v6460_v40  ;;  %v6093_v21 = vpop.f32.mrf.mxu3  ;;  %v2840_v3 = vpop.f32.mrf.mxu0  ;;  %v6506_v40 = vld [vmem:[#allocation55_spill] sm:$0xff] }
 0x1d6   : > { %3148 = vmatpush.bf16.msrb.mxu2 %v6461_v41  ;;  %v2853_v8 = vpop.f32.mrf.mxu1  ;;  %v6507_v41 = vld [vmem:[#allocation56_spill] sm:$0xff]  ;;  %v6517_v3 = vld [vmem:[#allocation66_spill] sm:$0xff] }
 0x1d7   : > { %3161 = vmatpush.bf16.msrb.mxu3 %v6462_v42  ;;  %v6508_v42 = vld [vmem:[#allocation57_spill] sm:$0xff]  ;;  %v6518_v8 = vld [vmem:[#allocation67_spill] sm:$0xff] }
 0x1d8   : > { %3123 = vmatpush.bf16.msrb.mxu0 %v6463_v43  ;;  %v6509_v43 = vld [vmem:[#allocation58_spill] sm:$0xff] }
 0x1d9   : > { %3136 = vmatpush.bf16.msrb.mxu1 %v6464_v44  ;;  %v6510_v44 = vld [vmem:[#allocation59_spill] sm:$0xff] }
 0x1da   : > { %3149 = vmatpush.bf16.msrb.mxu2 %v6465_v47 }
 0x1db   : > { %3162 = vmatpush.bf16.msrb.mxu3 %v6466_v48 }
 0x1dc   : > { %3124 = vmatpush.bf16.msrb.mxu0 %v6467_v59  ;;  %v2866_v15 = vpop.f32.mrf.mxu2  ;;  %v6511_v59 = vld [vmem:[#allocation60_spill] sm:$0xff] }
 0x1dd   : > { %3137 = vmatpush.bf16.msrb.mxu1 %v6468_v58  ;;  %v2879_v55 = vpop.f32.mrf.mxu3  ;;  %v6512_v58 = vld [vmem:[#allocation61_spill] sm:$0xff]  ;;  %v4925_v15 = vld [vmem:[%s5154_s15 + $0x28] sm:$0xf] }
 0x1de   : > { %3150 = vmatpush.bf16.msrb.mxu2 %v6469_v32  ;;  %v6513_v32 = vld [vmem:[#allocation62_spill] sm:$0xff] }
 0x1df   : > { %3163 = vmatpush.bf16.msrb.mxu3 %v6470_v50  ;;  %v6514_v50 = vld [vmem:[#allocation63_spill] sm:$0xff]  ;;  %v4926_v55 = vld [vmem:[%s5154_s15 + $0x2c] sm:$0xf] }
 0x1e0   : > { %3125 = vmatpush.bf16.msrb.mxu0 %v6471_v57  ;;  %v6515_v57 = vld [vmem:[#allocation64_spill] sm:$0xff] }
 0x1e1   : > { %3138 = vmatpush.bf16.msrb.mxu1 %v6472_v2  ;;  %v6516_v2 = vld [vmem:[#allocation65_spill] sm:$0xff] }
 0x1e2   : > { %3151 = vmatpush.bf16.msrb.mxu2 %v6473_v52  ;;  %v6519_v52 = vld [vmem:[#allocation68_spill] sm:$0xff] }
 0x1e3   : > { %3164 = vmatpush.bf16.msrb.mxu3 %v6474_v63  ;;  %v6520_v63 = vld [vmem:[#allocation69_spill] sm:$0xff] }
 0x1e4   : > { %3126 = vmatpush.bf16.msrb.mxu0 %v6475_v6  ;;  %v6521_v6 = vld [vmem:[#allocation70_spill] sm:$0xff] }
 0x1e5   : > { %3139 = vmatpush.bf16.msrb.mxu1 %v6476_v53  ;;  %v6522_v53 = vld [vmem:[#allocation71_spill] sm:$0xff] }
 0x1e6   : > { %3152 = vmatpush.bf16.msrb.mxu2 %v6477_v54  ;;  %v4923_v54 = vld [vmem:[%s5154_s15 + $0x20] sm:$0xf] }
 0x1e7   : > { %3165 = vmatpush.bf16.msrb.mxu3 %v6478_v13  ;;  %v4924_v13 = vld [vmem:[%s5154_s15 + $0x24] sm:$0xf] }
 0x1e8   : > { %3127 = vmatpush.bf16.msrb.mxu0 %v6479_v51  ;;  %v6523_v51 = vld [vmem:[#allocation72_spill] sm:$0xff] }
 0x1e9   : > { %3140 = vmatpush.bf16.msrb.mxu1 %v6480_v49  ;;  %v6524_v49 = vld [vmem:[#allocation73_spill] sm:$0xff] }
 0x1ea   : > { %3153 = vmatpush.bf16.msrb.mxu2 %v6481_v19  ;;  %v6525_v19 = vld [vmem:[#allocation74_spill] sm:$0xff] }
 0x1eb   : > { %3166 = vmatpush.bf16.msrb.mxu3 %v6482_v10  ;;  %v6526_v10 = vld [vmem:[#allocation75_spill] sm:$0xff] }
 0x1ec   : > { %3128 = vmatpush.bf16.msrb.mxu0 %v6483_v5  ;;  %v6125_v26 = vpop.f32.mrf.mxu0  ;;  %v6527_v5 = vld [vmem:[#allocation76_spill] sm:$0xff] }
 0x1ed   : > { %3141 = vmatpush.bf16.msrb.mxu1 %v6484_v4  ;;  %v6127_v62 = vpop.f32.mrf.mxu1  ;;  %v6528_v4 = vld [vmem:[#allocation77_spill] sm:$0xff] }
 0x1ee   : > { %3154 = vmatpush.bf16.msrb.mxu2 %v6485_v11 }
 0x1ef   : > { %3167 = vmatpush.bf16.msrb.mxu3 %v6486_v23  ;;  %3129 = vmatmul.bf16.vlgmr.msrb.gmra.mxu0 %v4919_v14  ;;  %v6533_v14 = vld [vmem:[#allocation82_spill] sm:$0xff] }
 0x1f0   : > { %3173 = vmatpush.bf16.msra.mxu0 %v6487_v18  ;;  %3142 = vmatmul.bf16.vlgmr.msrb.gmra.mxu1 %v4920_v56  ;;  %v6529_v18 = vld [vmem:[#allocation78_spill] sm:$0xff]  ;;  %v6534_v56 = vld [vmem:[#allocation83_spill] sm:$0xff] }
 0x1f1   : > { %3186 = vmatpush.bf16.msra.mxu1 %v6488_v61  ;;  %3155 = vmatmul.bf16.vlgmr.msrb.gmra.mxu2 %v4921_v17  ;;  %v6530_v61 = vld [vmem:[#allocation79_spill] sm:$0xff] }
 0x1f2   : > { %3199 = vmatpush.bf16.msra.mxu2 %v6489_v60  ;;  %3168 = vmatmul.bf16.vlgmr.msrb.gmra.mxu3 %v4922_v16  ;;  %v6531_v60 = vld [vmem:[#allocation80_spill] sm:$0xff] }
 0x1f3   : > { %3212 = vmatpush.bf16.msra.mxu3 %v6490_v9  ;;  %v6532_v9 = vld [vmem:[#allocation81_spill] sm:$0xff] }
 0x1f4   : > { %3174 = vmatpush.bf16.msra.mxu0 %v6491_v1  ;;  %v6135_v31 = vpop.f32.mrf.mxu2  ;;  %v2892_v37 = vpop.f32.mrf.mxu0  ;;  %v6535_v1 = vld [vmem:[#allocation84_spill] sm:$0xff] }
 0x1f5   : > { %3187 = vmatpush.bf16.msra.mxu1 %v6492_v0  ;;  %v6137_v34 = vpop.f32.mrf.mxu3  ;;  %v2905_v38 = vpop.f32.mrf.mxu1  ;;  %v6536_v0 = vld [vmem:[#allocation85_spill] sm:$0xff]  ;;  %v6545_v37 = vld [vmem:[#allocation94_spill] sm:$0xff] }
 0x1f6   : > { %3200 = vmatpush.bf16.msra.mxu2 %v6493_v7  ;;  %v6546_v38 = vld [vmem:[#allocation95_spill] sm:$0xff] }
 0x1f7   : > { %3213 = vmatpush.bf16.msra.mxu3 %v6494_v24 }
 0x1f8   : > { %3175 = vmatpush.bf16.msra.mxu0 %v6495_v25  ;;  %v6537_v25 = vld [vmem:[#allocation86_spill] sm:$0xff] }
 0x1f9   : > { %3188 = vmatpush.bf16.msra.mxu1 %v6496_v12  ;;  %v6538_v12 = vld [vmem:[#allocation87_spill] sm:$0xff] }
 0x1fa   : > { %3201 = vmatpush.bf16.msra.mxu2 %v6497_v27  ;;  %v6539_v27 = vld [vmem:[#allocation88_spill] sm:$0xff] }
 0x1fb   : > { %3214 = vmatpush.bf16.msra.mxu3 %v6498_v33  ;;  %v6540_v33 = vld [vmem:[#allocation89_spill] sm:$0xff] }
 0x1fc   : > { %3176 = vmatpush.bf16.msra.mxu0 %v6499_v22  ;;  %v2918_v47 = vpop.f32.mrf.mxu2  ;;  %v6541_v22 = vld [vmem:[#allocation90_spill] sm:$0xff] }
 0x1fd   : > { %3189 = vmatpush.bf16.msra.mxu1 %v6500_v28  ;;  %v2931_v48 = vpop.f32.mrf.mxu3  ;;  %v6542_v28 = vld [vmem:[#allocation91_spill] sm:$0xff]  ;;  %v4929_v47 = vld [vmem:[%s5154_s15 + $0x38] sm:$0xf] }
 0x1fe   : > { %3202 = vmatpush.bf16.msra.mxu2 %v6501_v29  ;;  %v4930_v48 = vld [vmem:[%s5154_s15 + $0x3c] sm:$0xf] }
 0x1ff   : > { %3215 = vmatpush.bf16.msra.mxu3 %v6502_v30 }
 0x200   : > { %3177 = vmatpush.bf16.msra.mxu0 %v6503_v35  ;;  %v6543_v35 = vld [vmem:[#allocation92_spill] sm:$0xff] }
 0x201   : > { %3190 = vmatpush.bf16.msra.mxu1 %v6504_v36  ;;  %v6544_v36 = vld [vmem:[#allocation93_spill] sm:$0xff] }
 0x202   : > { %3203 = vmatpush.bf16.msra.mxu2 %v6505_v39  ;;  %v6547_v39 = vld [vmem:[#allocation96_spill] sm:$0xff] }
 0x203   : > { %3216 = vmatpush.bf16.msra.mxu3 %v6506_v40  ;;  %v6548_v40 = vld [vmem:[#allocation97_spill] sm:$0xff] }
 0x204   : > { %3178 = vmatpush.bf16.msra.mxu0 %v6507_v41  ;;  %v6549_v41 = vld [vmem:[#allocation98_spill] sm:$0xff] }
 0x205   : > { %3191 = vmatpush.bf16.msra.mxu1 %v6508_v42  ;;  %v6550_v42 = vld [vmem:[#allocation99_spill] sm:$0xff] }
 0x206   : > { %3204 = vmatpush.bf16.msra.mxu2 %v6509_v43  ;;  %v4927_v43 = vld [vmem:[%s5154_s15 + $0x30] sm:$0xf] }
 0x207   : > { %3217 = vmatpush.bf16.msra.mxu3 %v6510_v44  ;;  %v4928_v44 = vld [vmem:[%s5154_s15 + $0x34] sm:$0xf] }
 0x208   : > { %3179 = vmatpush.bf16.msra.mxu0 %v6511_v59 }
 0x209   : > { %3192 = vmatpush.bf16.msra.mxu1 %v6512_v58 }
 0x20a   : > { %3205 = vmatpush.bf16.msra.mxu2 %v6513_v32 }
 0x20b   : > { %3218 = vmatpush.bf16.msra.mxu3 %v6514_v50 }
 0x20c   : > { %3180 = vmatpush.bf16.msra.mxu0 %v6515_v57  ;;  %v6169_v11 = vpop.f32.mrf.mxu0 }
 0x20d   : > { %3193 = vmatpush.bf16.msra.mxu1 %v6516_v2  ;;  %v6171_v23 = vpop.f32.mrf.mxu1 }
 0x20e   : > { %3206 = vmatpush.bf16.msra.mxu2 %v6517_v3 }
 0x20f   : > { %3219 = vmatpush.bf16.msra.mxu3 %v6518_v8  ;;  %3181 = vmatmul.bf16.vlgmr.msra.gmra.mxu0 %v4923_v54 }
 0x210   : > { %3225 = vmatpush.bf16.msrb.mxu0 %v6519_v52  ;;  %3194 = vmatmul.bf16.vlgmr.msra.gmra.mxu1 %v4924_v13 }
 0x211   : > { %3238 = vmatpush.bf16.msrb.mxu1 %v6520_v63  ;;  %3207 = vmatmul.bf16.vlgmr.msra.gmra.mxu2 %v4925_v15 }
 0x212   : > { %3251 = vmatpush.bf16.msrb.mxu2 %v6521_v6  ;;  %3220 = vmatmul.bf16.vlgmr.msra.gmra.mxu3 %v4926_v55 }
 0x213   : > { %3264 = vmatpush.bf16.msrb.mxu3 %v6522_v53 }
 0x214   : > { %3226 = vmatpush.bf16.msrb.mxu0 %v6523_v51  ;;  %v6179_v17 = vpop.f32.mrf.mxu2  ;;  %v2944_v7 = vpop.f32.mrf.mxu0 }
 0x215   : > { %3239 = vmatpush.bf16.msrb.mxu1 %v6524_v49  ;;  %v6181_v16 = vpop.f32.mrf.mxu3  ;;  %v2957_v24 = vpop.f32.mrf.mxu1 }
 0x216   : > { %3252 = vmatpush.bf16.msrb.mxu2 %v6525_v19 }
 0x217   : > { %3265 = vmatpush.bf16.msrb.mxu3 %v6526_v10 }
 0x218   : > { %3227 = vmatpush.bf16.msrb.mxu0 %v6527_v5 }
 0x219   : > { %3240 = vmatpush.bf16.msrb.mxu1 %v6528_v4 }
 0x21a   : > { %3253 = vmatpush.bf16.msrb.mxu2 %v6529_v18 }
 0x21b   : > { %3266 = vmatpush.bf16.msrb.mxu3 %v6530_v61 }
 0x21c   : > { %3228 = vmatpush.bf16.msrb.mxu0 %v6531_v60  ;;  %v2970_v29 = vpop.f32.mrf.mxu2 }
 0x21d   : > { %3241 = vmatpush.bf16.msrb.mxu1 %v6532_v9  ;;  %v2983_v30 = vpop.f32.mrf.mxu3 }
 0x21e   : > { %3254 = vmatpush.bf16.msrb.mxu2 %v6533_v14 }
 0x21f   : > { %3267 = vmatpush.bf16.msrb.mxu3 %v6534_v56 }
 0x220   : > { %3229 = vmatpush.bf16.msrb.mxu0 %v6535_v1 }
 0x221   : > { %3242 = vmatpush.bf16.msrb.mxu1 %v6536_v0 }
 0x222   : > { %3255 = vmatpush.bf16.msrb.mxu2 %v6537_v25 }
 0x223   : > { %3268 = vmatpush.bf16.msrb.mxu3 %v6538_v12 }
 0x224   : > { %3230 = vmatpush.bf16.msrb.mxu0 %v6539_v27 }
 0x225   : > { %3243 = vmatpush.bf16.msrb.mxu1 %v6540_v33 }
 0x226   : > { %3256 = vmatpush.bf16.msrb.mxu2 %v6541_v22 }
 0x227   : > { %3269 = vmatpush.bf16.msrb.mxu3 %v6542_v28 }
 0x228   : > { %3231 = vmatpush.bf16.msrb.mxu0 %v6543_v35 }
 0x229   : > { %3244 = vmatpush.bf16.msrb.mxu1 %v6544_v36 }
 0x22a   : > { %3257 = vmatpush.bf16.msrb.mxu2 %v6545_v37 }
 0x22b   : > { %3270 = vmatpush.bf16.msrb.mxu3 %v6546_v38 }
 0x22c   : > { %3232 = vmatpush.bf16.msrb.mxu0 %v6547_v39  ;;  %v2994_v59 = vpop.f32.mrf.mxu0 }
 0x22d   : > { %3245 = vmatpush.bf16.msrb.mxu1 %v6548_v40  ;;  %v3007_v58 = vpop.f32.mrf.mxu1 }
 0x22e   : > { %3258 = vmatpush.bf16.msrb.mxu2 %v6549_v41 }
 0x22f   : > { %3271 = vmatpush.bf16.msrb.mxu3 %v6550_v42  ;;  %3233 = vmatmul.bf16.vlgmr.msrb.gmra.mxu0 %v4927_v43 }
 0x230   : > { %3246 = vmatmul.bf16.vlgmr.msrb.gmra.mxu1 %v4928_v44 }
 0x231   : > { %3259 = vmatmul.bf16.vlgmr.msrb.gmra.mxu2 %v4929_v47 }
 0x232   : > { %3272 = vmatmul.bf16.vlgmr.msrb.gmra.mxu3 %v4930_v48 }
 0x234   : > { %v6203_v32 = vpop.f32.mrf.mxu2  ;;  %v2996_v57 = vpop.f32.mrf.mxu0 }
 0x235   : > { %v6205_v50 = vpop.f32.mrf.mxu3  ;;  %v3009_v2 = vpop.f32.mrf.mxu1 }
 0x23c   : > { %v3022_v3 = vpop.f32.mrf.mxu2 }
 0x23d   : > { %v3035_v8 = vpop.f32.mrf.mxu3 }
 0x24c   : > { %v3078_v52 = vpop.f32.mrf.mxu0 }
 0x24d   : > { %v3091_v63 = vpop.f32.mrf.mxu1  ;;  %v3079_v6 = vadd.f32 %v3078_v52, %v6081_v45 }
 0x24e   : > { %v3092_v53 = vadd.f32 %v3091_v63, %v6083_v46 }
 0x24f   : > { %3277 = vst [vmem:[%s6212_s7] sm:$0xff] %v3079_v6 }
 0x250   : > { %3278 = vst [vmem:[%s6212_s7 + $0x8] sm:$0xff] %v3092_v53 }
 0x254   : > { %v3104_v54 = vpop.f32.mrf.mxu2  ;;  %v3080_v51 = vpop.f32.mrf.mxu0 }
 0x255   : > { %v3117_v13 = vpop.f32.mrf.mxu3  ;;  %v3105_v15 = vadd.f32 %v3104_v54, %v6091_v20  ;;  %v3093_v49 = vpop.f32.mrf.mxu1 }
 0x256   : > { %v3118_v55 = vadd.f32 %v3117_v13, %v6093_v21 }
 0x257   : > { %3279 = vst [vmem:[%s6212_s7 + $0x10] sm:$0xff] %v3105_v15 }
 0x258   : > { %3280 = vst [vmem:[%s6212_s7 + $0x18] sm:$0xff] %v3118_v55 }
 0x25c   : > { %v3106_v19 = vpop.f32.mrf.mxu2 }
 0x25d   : > { %v3119_v45 = vpop.f32.mrf.mxu3 }
 0x26c   : > { %v3130_v10 = vpop.f32.mrf.mxu0 }
 0x26d   : > { %v3143_v46 = vpop.f32.mrf.mxu1  ;;  %v3131_v5 = vadd.f32 %v3130_v10, %v6125_v26 }
 0x26e   : > { %v3144_v4 = vadd.f32 %v3143_v46, %v6127_v62 }
 0x26f   : > { %3281 = vst [vmem:[%s6212_s7 + $0x20] sm:$0xff] %v3131_v5 }
 0x270   : > { %3282 = vst [vmem:[%s6212_s7 + $0x28] sm:$0xff] %v3144_v4 }
 0x274   : > { %v3156_v20 = vpop.f32.mrf.mxu2  ;;  %v3132_v60 = vpop.f32.mrf.mxu0 }
 0x275   : > { %v3169_v21 = vpop.f32.mrf.mxu3  ;;  %v3157_v18 = vadd.f32 %v3156_v20, %v6135_v31  ;;  %v3145_v9 = vpop.f32.mrf.mxu1 }
 0x276   : > { %v3170_v61 = vadd.f32 %v3169_v21, %v6137_v34 }
 0x277   : > { %3283 = vst [vmem:[%s6212_s7 + $0x30] sm:$0xff] %v3157_v18 }
 0x278   : > { %3284 = vst [vmem:[%s6212_s7 + $0x38] sm:$0xff] %v3170_v61 }
 0x27c   : > { %v3158_v14 = vpop.f32.mrf.mxu2 }
 0x27d   : > { %v3171_v26 = vpop.f32.mrf.mxu3 }
 0x28c   : > { %v3182_v56 = vpop.f32.mrf.mxu0 }
 0x28d   : > { %v3195_v62 = vpop.f32.mrf.mxu1  ;;  %v3183_v1 = vadd.f32 %v3182_v56, %v6169_v11 }
 0x28e   : > { %v3196_v0 = vadd.f32 %v3195_v62, %v6171_v23 }
 0x28f   : > { %3285 = vst [vmem:[%s6212_s7 + $0x40] sm:$0xff] %v3183_v1 }
 0x290   : > { %3286 = vst [vmem:[%s6212_s7 + $0x48] sm:$0xff] %v3196_v0 }
 0x294   : > { %v3208_v31 = vpop.f32.mrf.mxu2  ;;  %v3184_v25 = vpop.f32.mrf.mxu0 }
 0x295   : > { %v3221_v34 = vpop.f32.mrf.mxu3  ;;  %v3209_v7 = vadd.f32 %v3208_v31, %v6179_v17  ;;  %v3197_v12 = vpop.f32.mrf.mxu1 }
 0x296   : > { %v3222_v24 = vadd.f32 %v3221_v34, %v6181_v16 }
 0x297   : > { %3287 = vst [vmem:[%s6212_s7 + $0x50] sm:$0xff] %v3209_v7 }
 0x298   : > { %3288 = vst [vmem:[%s6212_s7 + $0x58] sm:$0xff] %v3222_v24 }
 0x29c   : > { %v3210_v27 = vpop.f32.mrf.mxu2 }
 0x29d   : > { %v3223_v11 = vpop.f32.mrf.mxu3 }
 0x2ac   : > { %v3234_v33 = vpop.f32.mrf.mxu0 }
 0x2ad   : > { %v3247_v23 = vpop.f32.mrf.mxu1  ;;  %v3235_v22 = vadd.f32 %v3234_v33, %v2994_v59 }
 0x2ae   : > { %v3248_v28 = vadd.f32 %v3247_v23, %v3007_v58 }
 0x2af   : > { %3289 = vst [vmem:[%s6212_s7 + $0x60] sm:$0xff] %v3235_v22 }
 0x2b0   : > { %3290 = vst [vmem:[%s6212_s7 + $0x68] sm:$0xff] %v3248_v28 }
 0x2b4   : > { %v3260_v29 = vpop.f32.mrf.mxu2  ;;  %v3236_v35 = vpop.f32.mrf.mxu0 }
 0x2b5   : > { %v3273_v30 = vpop.f32.mrf.mxu3  ;;  %v3261_v17 = vadd.f32 %v3260_v29, %v6203_v32  ;;  %v3249_v36 = vpop.f32.mrf.mxu1 }
 0x2b6   : > { %v3274_v16 = vadd.f32 %v3273_v30, %v6205_v50 }
 0x2b7   : > { %3291 = vst [vmem:[%s6212_s7 + $0x70] sm:$0xff] %v3261_v17 }
 0x2b8   : > { %3292 = vst [vmem:[%s6212_s7 + $0x78] sm:$0xff] %v3274_v16 }
 0x2bc   : > { %v3262_v37 = vpop.f32.mrf.mxu2 }
 0x2bd   : > { %v3275_v38 = vpop.f32.mrf.mxu3 }
 0x2be PF: > { %p16_p7 = scmp.ge.s32.totalorder %s5049_s23, 4   ;;  %s6551_s18 = smov %s4987_s19 }
 0x2bf   : > { %s6552_s19 = smov %s4991_s20  ;;  %s6553_s20 = smov %s5059_s26 }
 0x2c0   : > { %s6554_s21 = smov %s5049_s23  ;;  %18 = sbr.rel (!%p16_p7) target bundleno = 3 (0x3), region = 97 }
 0x2c5   :  { %3332 = vsyncpa [#allocation3], 1 }
 0x2c6   :  { %3334 = vsyncpa [#allocation3 + $0x1], 1 }

</bundles_post_ra>
